<compile_context>
chip_gen: v6e
topology: v6e:2x2x1
jax: 0.10.0
libtpu: 0.0.40
codegen_flags: <defaults>
</compile_context>

<pallas_src>
import functools

import jax
import jax.numpy as jnp
from jax import lax
from jax.experimental import pallas as pl
from jax.experimental.pallas import tpu as pltpu


def _lfusion_kernel(mask_l_ref, mask_r_ref, x1_ref, x2_ref,
                    w1_ref, b1_ref, w2_ref, b2_ref, w3_ref, b3_ref,
                    out_ref, *, W):
    """One grid step processes a block of NB images, each stored as (C, H*W)."""
    NB, C, HW = x1_ref.shape
    PAD = W + 1
    taps = [(ky - 1, kx - 1) for ky in range(3) for kx in range(3)]

    # Hoisted once per grid step.
    mask_l = mask_l_ref[...]          # (1, HW): 0 where col == 0     (dx = -1 taps)
    mask_r = mask_r_ref[...]          # (1, HW): 0 where col == W - 1 (dx = +1 taps)
    w1 = w1_ref[...]                  # (C, 9C)
    w2 = w2_ref[...]                  # (C, 9C)
    w3 = w3_ref[...]                  # (C, 18C)
    b1 = b1_ref[...]                  # (C, 1)
    b2 = b2_ref[...]
    b3 = b3_ref[...]

    def pad_flat(x2d):
        # Zero-pad the flattened spatial axis so every vertical (dy) tap that
        # walks off the image lands in zeros; only dx=+-1 needs a column mask.
        z = jnp.zeros((x2d.shape[0], PAD), x2d.dtype)
        return jnp.concatenate([z, x2d, z], axis=1)        # (Cin, HW + 2*PAD)

    def tap(xp, dy, dx):
        s = dy * W + dx
        t = xp[:, PAD + s: PAD + s + HW]                   # static lane slice
        if dx == -1:
            t = t * mask_l
        elif dx == 1:
            t = t * mask_r
        return t                                           # (Cin, HW)

    def patches_one(xp):                                   # -> (9*C, HW)
        return jnp.concatenate([tap(xp, dy, dx) for dy, dx in taps], axis=0)

    def patches_pair(ap, bp):                              # -> (18*C, HW)
        parts = []
        for dy, dx in taps:                                # PyTorch cat order:
            parts.append(tap(ap, dy, dx))                  #   y1 channels first,
            parts.append(tap(bp, dy, dx))                  #   then y2 channels
        return jnp.concatenate(parts, axis=0)

    for n in range(NB):                                    # static unroll over batch block
        x1 = x1_ref[n]                                     # (C, HW)
        x2 = x2_ref[n]
        y1 = jax.nn.relu(
            jnp.dot(w1, patches_one(pad_flat(x1)),
                    preferred_element_type=jnp.float32) + b1) + x1
        y2 = jax.nn.relu(
            jnp.dot(w2, patches_one(pad_flat(x2)),
                    preferred_element_type=jnp.float32) + b2) + x2
        gate = jax.nn.sigmoid(
            jnp.dot(w3, patches_pair(pad_flat(y1), pad_flat(y2)),
                    preferred_element_type=jnp.float32) + b3)
        out_ref[n] = (y1 * gate + y2 * (1.0 - gate)).astype(out_ref.dtype)


def _flatten_conv_w(w_oihw):
    """(Cout, Cin, 3, 3) OIHW -> (Cout, 9*Cin), tap-major then input channel."""
    cout, cin, kh, kw = w_oihw.shape
    return jnp.transpose(w_oihw, (0, 2, 3, 1)).reshape(cout, kh * kw * cin)


def _pick_batch_block(n, max_nb=8):
    nb = min(n, max_nb)
    while n % nb:
        nb -= 1
    return nb


@functools.partial(jax.jit, static_argnames=("batch_block",))
def lfusion_pallas(x1, x2, params, batch_block=None):
    """Pallas implementation of LfusionNet.forward. x1, x2: NCHW float32."""
    w1, b1, w2, b2, w3, b3 = params            # OIHW conv weights (PyTorch layout)
    N, C, H, W = x1.shape
    HW = H * W
    nb = batch_block if batch_block is not None else _pick_batch_block(N)
    assert N % nb == 0, "batch_block must divide the batch size"

    # Free reshapes only -- no pad / transpose round trip in HBM.
    x1f = x1.reshape(N, C, HW)
    x2f = x2.reshape(N, C, HW)

    # im2col-flattened weights, column-vector biases, and the two column masks
    # (all constant-folded by XLA; masks are tiny).
    w1f = _flatten_conv_w(w1)
    w2f = _flatten_conv_w(w2)
    w3f = _flatten_conv_w(w3)
    b1c = b1.reshape(C, 1)
    b2c = b2.reshape(C, 1)
    b3c = b3.reshape(C, 1)
    col = jnp.arange(HW, dtype=jnp.int32) % W
    mask_l = (col != 0).astype(jnp.float32).reshape(1, HW)        # dx = -1 taps
    mask_r = (col != W - 1).astype(jnp.float32).reshape(1, HW)    # dx = +1 taps

    img_spec = pl.BlockSpec((nb, C, HW), lambda b: (b, 0, 0))
    full = lambda r, c: pl.BlockSpec((r, c), lambda b: (0, 0))

    out_flat = pl.pallas_call(
        functools.partial(_lfusion_kernel, W=W),
        out_shape=jax.ShapeDtypeStruct((N, C, HW), x1.dtype),
        grid_spec=pltpu.PrefetchScalarGridSpec(
            num_scalar_prefetch=0,
            grid=(N // nb,),
            in_specs=[
                full(1, HW), full(1, HW),             # column masks
                img_spec, img_spec,                   # x1, x2 (flattened NCHW)
                full(C, 9 * C), full(C, 1),           # conv1 w, b
                full(C, 9 * C), full(C, 1),           # conv2 w, b
                full(C, 18 * C), full(C, 1),          # conv3 w (fused halves), b
            ],
            out_specs=img_spec,
        ),
        compiler_params=pltpu.CompilerParams(
            dimension_semantics=("parallel",)),
    )(mask_l, mask_r, x1f, x2f, w1f, b1c, w2f, b2c, w3f, b3c)

    return out_flat.reshape(N, C, H, W)


def init_params(key, num):
    """PyTorch-style uniform init, OIHW layout. conv4 is unused in forward()."""
    keys = jax.random.split(key, 6)

    def conv_init(kw, kb, cin, cout):
        bound = 1.0 / (cin * 9.0) ** 0.5
        w = jax.random.uniform(kw, (cout, cin, 3, 3), jnp.float32, -bound, bound)
        b = jax.random.uniform(kb, (cout,), jnp.float32, -bound, bound)
        return w, b

    w1, b1 = conv_init(keys[0], keys[1], num, num)
    w2, b2 = conv_init(keys[2], keys[3], num, num)
    w3, b3 = conv_init(keys[4], keys[5], 2 * num, num)
    return (w1, b1, w2, b2, w3, b3)


def reference_forward(x1, x2, params):
    """Pure-JAX/XLA reference matching the PyTorch semantics (NCHW)."""
    w1, b1, w2, b2, w3, b3 = params

    def conv(x, w, b):
        y = lax.conv_general_dilated(
            x, w, window_strides=(1, 1), padding="SAME",
            dimension_numbers=("NCHW", "OIHW", "NCHW"))
        return y + b[None, :, None, None]

    x11 = jax.nn.relu(conv(x1, w1, b1)) + x1
    x22 = jax.nn.relu(conv(x2, w2, b2)) + x2
    g = jax.nn.sigmoid(conv(jnp.concatenate([x11, x22], axis=1), w3, b3))
    return x11 * g + x22 * (1.0 - g)


if __name__ == "__main__":
    key = jax.random.PRNGKey(0)
    k1, k2, kp = jax.random.split(key, 3)

    N, C, H, W = 2, 4, 16, 16
    x1 = jax.random.normal(k1, (N, C, H, W), jnp.float32)
    x2 = jax.random.normal(k2, (N, C, H, W), jnp.float32)
    params = init_params(kp, C)

    out = jax.block_until_ready(lfusion_pallas(x1, x2, params))
    ref = reference_forward(x1, x2, params)

    assert out.shape == (N, C, H, W)
    assert jnp.allclose(out, ref, rtol=1e-4, atol=1e-4), \
        f"max abs err = {float(jnp.max(jnp.abs(out - ref)))}"

    print("KERNEL_OK")
</pallas_src>

<mosaic_0001>
module attributes {stable_mosaic.version = 11 : i64} {
  func.func @_lfusion_kernel(%arg0: i32, %arg1: memref<1x256xf32, #tpu.memory_space<vmem>>, %arg2: memref<1x256xf32, #tpu.memory_space<vmem>>, %arg3: memref<2x4x256xf32, #tpu.memory_space<vmem>>, %arg4: memref<2x4x256xf32, #tpu.memory_space<vmem>>, %arg5: memref<4x36xf32, #tpu.memory_space<vmem>>, %arg6: memref<4x1xf32, #tpu.memory_space<vmem>>, %arg7: memref<4x36xf32, #tpu.memory_space<vmem>>, %arg8: memref<4x1xf32, #tpu.memory_space<vmem>>, %arg9: memref<4x72xf32, #tpu.memory_space<vmem>>, %arg10: memref<4x1xf32, #tpu.memory_space<vmem>>, %arg11: memref<2x4x256xf32, #tpu.memory_space<vmem>>) attributes {dimension_semantics = [#tpu.dimension_semantics<parallel>], iteration_bounds = array<i64: 1>, scalar_prefetch = 0 : i64, scratch_operands = 0 : i64, tpu.core_type = #tpu.core_type<tc>, window_params = [{pipeline_mode = #tpu.pipeline_mode<synchronous>, transform_indices = @transform_0, window_bounds = array<i64: 1, 256>}, {pipeline_mode = #tpu.pipeline_mode<synchronous>, transform_indices = @transform_1, window_bounds = array<i64: 1, 256>}, {transform_indices = @transform_2, window_bounds = array<i64: 2, 4, 256>}, {transform_indices = @transform_3, window_bounds = array<i64: 2, 4, 256>}, {pipeline_mode = #tpu.pipeline_mode<synchronous>, transform_indices = @transform_4, window_bounds = array<i64: 4, 36>}, {pipeline_mode = #tpu.pipeline_mode<synchronous>, transform_indices = @transform_5, window_bounds = array<i64: 4, 1>}, {pipeline_mode = #tpu.pipeline_mode<synchronous>, transform_indices = @transform_6, window_bounds = array<i64: 4, 36>}, {pipeline_mode = #tpu.pipeline_mode<synchronous>, transform_indices = @transform_7, window_bounds = array<i64: 4, 1>}, {pipeline_mode = #tpu.pipeline_mode<synchronous>, transform_indices = @transform_8, window_bounds = array<i64: 4, 72>}, {pipeline_mode = #tpu.pipeline_mode<synchronous>, transform_indices = @transform_9, window_bounds = array<i64: 4, 1>}, {transform_indices = @transform_10, window_bounds = array<i64: 2, 4, 256>}]} {
    %c0 = arith.constant 0 : index
    %c0_0 = arith.constant 0 : index
    %0 = vector.load %arg1[%c0, %c0_0] : memref<1x256xf32, #tpu.memory_space<vmem>>, vector<1x256xf32>
    %c0_1 = arith.constant 0 : index
    %c0_2 = arith.constant 0 : index
    %1 = vector.load %arg2[%c0_1, %c0_2] : memref<1x256xf32, #tpu.memory_space<vmem>>, vector<1x256xf32>
    %c0_3 = arith.constant 0 : index
    %c0_4 = arith.constant 0 : index
    %2 = vector.load %arg5[%c0_3, %c0_4] : memref<4x36xf32, #tpu.memory_space<vmem>>, vector<4x36xf32>
    %c0_5 = arith.constant 0 : index
    %c0_6 = arith.constant 0 : index
    %3 = vector.load %arg7[%c0_5, %c0_6] : memref<4x36xf32, #tpu.memory_space<vmem>>, vector<4x36xf32>
    %c0_7 = arith.constant 0 : index
    %c0_8 = arith.constant 0 : index
    %4 = vector.load %arg9[%c0_7, %c0_8] : memref<4x72xf32, #tpu.memory_space<vmem>>, vector<4x72xf32>
    %c0_9 = arith.constant 0 : index
    %c0_10 = arith.constant 0 : index
    %5 = vector.load %arg6[%c0_9, %c0_10] : memref<4x1xf32, #tpu.memory_space<vmem>>, vector<4x1xf32>
    %c0_11 = arith.constant 0 : index
    %c0_12 = arith.constant 0 : index
    %6 = vector.load %arg8[%c0_11, %c0_12] : memref<4x1xf32, #tpu.memory_space<vmem>>, vector<4x1xf32>
    %c0_13 = arith.constant 0 : index
    %c0_14 = arith.constant 0 : index
    %7 = vector.load %arg10[%c0_13, %c0_14] : memref<4x1xf32, #tpu.memory_space<vmem>>, vector<4x1xf32>
    %c0_15 = arith.constant 0 : index
    %c0_16 = arith.constant 0 : index
    %c0_17 = arith.constant 0 : index
    %8 = vector.load %arg3[%c0_15, %c0_16, %c0_17] : memref<2x4x256xf32, #tpu.memory_space<vmem>>, vector<1x4x256xf32>
    %9 = vector.shape_cast %8 : vector<1x4x256xf32> to vector<4x256xf32>
    %c0_18 = arith.constant 0 : index
    %c0_19 = arith.constant 0 : index
    %c0_20 = arith.constant 0 : index
    %10 = vector.load %arg4[%c0_18, %c0_19, %c0_20] : memref<2x4x256xf32, #tpu.memory_space<vmem>>, vector<1x4x256xf32>
    %11 = vector.shape_cast %10 : vector<1x4x256xf32> to vector<4x256xf32>
    %cst = arith.constant 0.000000e+00 : f32
    %12 = vector.broadcast %cst : f32 to vector<4x17xf32>
    %13 = tpu.concatenate %12, %9, %12 in 1 : vector<4x17xf32>, vector<4x256xf32>, vector<4x17xf32> -> vector<4x290xf32>
    %14 = vector.extract_strided_slice %13 {offsets = [0, 0], sizes = [4, 256], strides = [1, 1]} : vector<4x290xf32> to vector<4x256xf32>
    %15 = vector.broadcast %0 : vector<1x256xf32> to vector<4x256xf32>
    %16 = arith.mulf %14, %15 : vector<4x256xf32>
    %17 = vector.extract_strided_slice %13 {offsets = [0, 1], sizes = [4, 256], strides = [1, 1]} : vector<4x290xf32> to vector<4x256xf32>
    %18 = vector.extract_strided_slice %13 {offsets = [0, 2], sizes = [4, 256], strides = [1, 1]} : vector<4x290xf32> to vector<4x256xf32>
    %19 = vector.broadcast %1 : vector<1x256xf32> to vector<4x256xf32>
    %20 = arith.mulf %18, %19 : vector<4x256xf32>
    %21 = vector.extract_strided_slice %13 {offsets = [0, 16], sizes = [4, 256], strides = [1, 1]} : vector<4x290xf32> to vector<4x256xf32>
    %22 = vector.broadcast %0 : vector<1x256xf32> to vector<4x256xf32>
    %23 = arith.mulf %21, %22 : vector<4x256xf32>
    %24 = vector.extract_strided_slice %13 {offsets = [0, 17], sizes = [4, 256], strides = [1, 1]} : vector<4x290xf32> to vector<4x256xf32>
    %25 = vector.extract_strided_slice %13 {offsets = [0, 18], sizes = [4, 256], strides = [1, 1]} : vector<4x290xf32> to vector<4x256xf32>
    %26 = vector.broadcast %1 : vector<1x256xf32> to vector<4x256xf32>
    %27 = arith.mulf %25, %26 : vector<4x256xf32>
    %28 = vector.extract_strided_slice %13 {offsets = [0, 32], sizes = [4, 256], strides = [1, 1]} : vector<4x290xf32> to vector<4x256xf32>
    %29 = vector.broadcast %0 : vector<1x256xf32> to vector<4x256xf32>
    %30 = arith.mulf %28, %29 : vector<4x256xf32>
    %31 = vector.extract_strided_slice %13 {offsets = [0, 33], sizes = [4, 256], strides = [1, 1]} : vector<4x290xf32> to vector<4x256xf32>
    %32 = vector.extract_strided_slice %13 {offsets = [0, 34], sizes = [4, 256], strides = [1, 1]} : vector<4x290xf32> to vector<4x256xf32>
    %33 = vector.broadcast %1 : vector<1x256xf32> to vector<4x256xf32>
    %34 = arith.mulf %32, %33 : vector<4x256xf32>
    %35 = tpu.concatenate %16, %17, %20, %23, %24, %27, %30, %31, %34 in 0 : vector<4x256xf32>, vector<4x256xf32>, vector<4x256xf32>, vector<4x256xf32>, vector<4x256xf32>, vector<4x256xf32>, vector<4x256xf32>, vector<4x256xf32>, vector<4x256xf32> -> vector<36x256xf32>
    %cst_21 = arith.constant dense<0.000000e+00> : vector<4x256xf32>
    %36 = tpu.matmul %2, %35, %cst_21 {dimension_numbers = #tpu.dot_dimension_numbers<[1], [0], [0], [1], [0, 0, 1, 1], [], []>} : vector<4x36xf32>, vector<36x256xf32>, vector<4x256xf32> -> vector<4x256xf32>
    %37 = vector.broadcast %5 : vector<4x1xf32> to vector<4x256xf32>
    %38 = arith.addf %36, %37 : vector<4x256xf32>
    %cst_22 = arith.constant 0.000000e+00 : f32
    %39 = vector.broadcast %cst_22 : f32 to vector<4x256xf32>
    %40 = arith.maximumf %38, %39 : vector<4x256xf32>
    %41 = arith.addf %40, %9 : vector<4x256xf32>
    %cst_23 = arith.constant 0.000000e+00 : f32
    %42 = vector.broadcast %cst_23 : f32 to vector<4x17xf32>
    %43 = tpu.concatenate %42, %11, %42 in 1 : vector<4x17xf32>, vector<4x256xf32>, vector<4x17xf32> -> vector<4x290xf32>
    %44 = vector.extract_strided_slice %43 {offsets = [0, 0], sizes = [4, 256], strides = [1, 1]} : vector<4x290xf32> to vector<4x256xf32>
    %45 = vector.broadcast %0 : vector<1x256xf32> to vector<4x256xf32>
    %46 = arith.mulf %44, %45 : vector<4x256xf32>
    %47 = vector.extract_strided_slice %43 {offsets = [0, 1], sizes = [4, 256], strides = [1, 1]} : vector<4x290xf32> to vector<4x256xf32>
    %48 = vector.extract_strided_slice %43 {offsets = [0, 2], sizes = [4, 256], strides = [1, 1]} : vector<4x290xf32> to vector<4x256xf32>
    %49 = vector.broadcast %1 : vector<1x256xf32> to vector<4x256xf32>
    %50 = arith.mulf %48, %49 : vector<4x256xf32>
    %51 = vector.extract_strided_slice %43 {offsets = [0, 16], sizes = [4, 256], strides = [1, 1]} : vector<4x290xf32> to vector<4x256xf32>
    %52 = vector.broadcast %0 : vector<1x256xf32> to vector<4x256xf32>
    %53 = arith.mulf %51, %52 : vector<4x256xf32>
    %54 = vector.extract_strided_slice %43 {offsets = [0, 17], sizes = [4, 256], strides = [1, 1]} : vector<4x290xf32> to vector<4x256xf32>
    %55 = vector.extract_strided_slice %43 {offsets = [0, 18], sizes = [4, 256], strides = [1, 1]} : vector<4x290xf32> to vector<4x256xf32>
    %56 = vector.broadcast %1 : vector<1x256xf32> to vector<4x256xf32>
    %57 = arith.mulf %55, %56 : vector<4x256xf32>
    %58 = vector.extract_strided_slice %43 {offsets = [0, 32], sizes = [4, 256], strides = [1, 1]} : vector<4x290xf32> to vector<4x256xf32>
    %59 = vector.broadcast %0 : vector<1x256xf32> to vector<4x256xf32>
    %60 = arith.mulf %58, %59 : vector<4x256xf32>
    %61 = vector.extract_strided_slice %43 {offsets = [0, 33], sizes = [4, 256], strides = [1, 1]} : vector<4x290xf32> to vector<4x256xf32>
    %62 = vector.extract_strided_slice %43 {offsets = [0, 34], sizes = [4, 256], strides = [1, 1]} : vector<4x290xf32> to vector<4x256xf32>
    %63 = vector.broadcast %1 : vector<1x256xf32> to vector<4x256xf32>
    %64 = arith.mulf %62, %63 : vector<4x256xf32>
    %65 = tpu.concatenate %46, %47, %50, %53, %54, %57, %60, %61, %64 in 0 : vector<4x256xf32>, vector<4x256xf32>, vector<4x256xf32>, vector<4x256xf32>, vector<4x256xf32>, vector<4x256xf32>, vector<4x256xf32>, vector<4x256xf32>, vector<4x256xf32> -> vector<36x256xf32>
    %cst_24 = arith.constant dense<0.000000e+00> : vector<4x256xf32>
    %66 = tpu.matmul %3, %65, %cst_24 {dimension_numbers = #tpu.dot_dimension_numbers<[1], [0], [0], [1], [0, 0, 1, 1], [], []>} : vector<4x36xf32>, vector<36x256xf32>, vector<4x256xf32> -> vector<4x256xf32>
    %67 = vector.broadcast %6 : vector<4x1xf32> to vector<4x256xf32>
    %68 = arith.addf %66, %67 : vector<4x256xf32>
    %cst_25 = arith.constant 0.000000e+00 : f32
    %69 = vector.broadcast %cst_25 : f32 to vector<4x256xf32>
    %70 = arith.maximumf %68, %69 : vector<4x256xf32>
    %71 = arith.addf %70, %11 : vector<4x256xf32>
    %cst_26 = arith.constant 0.000000e+00 : f32
    %72 = vector.broadcast %cst_26 : f32 to vector<4x17xf32>
    %73 = tpu.concatenate %72, %41, %72 in 1 : vector<4x17xf32>, vector<4x256xf32>, vector<4x17xf32> -> vector<4x290xf32>
    %cst_27 = arith.constant 0.000000e+00 : f32
    %74 = vector.broadcast %cst_27 : f32 to vector<4x17xf32>
    %75 = tpu.concatenate %74, %71, %74 in 1 : vector<4x17xf32>, vector<4x256xf32>, vector<4x17xf32> -> vector<4x290xf32>
    %76 = vector.extract_strided_slice %73 {offsets = [0, 0], sizes = [4, 256], strides = [1, 1]} : vector<4x290xf32> to vector<4x256xf32>
    %77 = vector.broadcast %0 : vector<1x256xf32> to vector<4x256xf32>
    %78 = arith.mulf %76, %77 : vector<4x256xf32>
    %79 = vector.extract_strided_slice %75 {offsets = [0, 0], sizes = [4, 256], strides = [1, 1]} : vector<4x290xf32> to vector<4x256xf32>
    %80 = vector.broadcast %0 : vector<1x256xf32> to vector<4x256xf32>
    %81 = arith.mulf %79, %80 : vector<4x256xf32>
    %82 = vector.extract_strided_slice %73 {offsets = [0, 1], sizes = [4, 256], strides = [1, 1]} : vector<4x290xf32> to vector<4x256xf32>
    %83 = vector.extract_strided_slice %75 {offsets = [0, 1], sizes = [4, 256], strides = [1, 1]} : vector<4x290xf32> to vector<4x256xf32>
    %84 = vector.extract_strided_slice %73 {offsets = [0, 2], sizes = [4, 256], strides = [1, 1]} : vector<4x290xf32> to vector<4x256xf32>
    %85 = vector.broadcast %1 : vector<1x256xf32> to vector<4x256xf32>
    %86 = arith.mulf %84, %85 : vector<4x256xf32>
    %87 = vector.extract_strided_slice %75 {offsets = [0, 2], sizes = [4, 256], strides = [1, 1]} : vector<4x290xf32> to vector<4x256xf32>
    %88 = vector.broadcast %1 : vector<1x256xf32> to vector<4x256xf32>
    %89 = arith.mulf %87, %88 : vector<4x256xf32>
    %90 = vector.extract_strided_slice %73 {offsets = [0, 16], sizes = [4, 256], strides = [1, 1]} : vector<4x290xf32> to vector<4x256xf32>
    %91 = vector.broadcast %0 : vector<1x256xf32> to vector<4x256xf32>
    %92 = arith.mulf %90, %91 : vector<4x256xf32>
    %93 = vector.extract_strided_slice %75 {offsets = [0, 16], sizes = [4, 256], strides = [1, 1]} : vector<4x290xf32> to vector<4x256xf32>
    %94 = vector.broadcast %0 : vector<1x256xf32> to vector<4x256xf32>
    %95 = arith.mulf %93, %94 : vector<4x256xf32>
    %96 = vector.extract_strided_slice %73 {offsets = [0, 17], sizes = [4, 256], strides = [1, 1]} : vector<4x290xf32> to vector<4x256xf32>
    %97 = vector.extract_strided_slice %75 {offsets = [0, 17], sizes = [4, 256], strides = [1, 1]} : vector<4x290xf32> to vector<4x256xf32>
    %98 = vector.extract_strided_slice %73 {offsets = [0, 18], sizes = [4, 256], strides = [1, 1]} : vector<4x290xf32> to vector<4x256xf32>
    %99 = vector.broadcast %1 : vector<1x256xf32> to vector<4x256xf32>
    %100 = arith.mulf %98, %99 : vector<4x256xf32>
    %101 = vector.extract_strided_slice %75 {offsets = [0, 18], sizes = [4, 256], strides = [1, 1]} : vector<4x290xf32> to vector<4x256xf32>
    %102 = vector.broadcast %1 : vector<1x256xf32> to vector<4x256xf32>
    %103 = arith.mulf %101, %102 : vector<4x256xf32>
    %104 = vector.extract_strided_slice %73 {offsets = [0, 32], sizes = [4, 256], strides = [1, 1]} : vector<4x290xf32> to vector<4x256xf32>
    %105 = vector.broadcast %0 : vector<1x256xf32> to vector<4x256xf32>
    %106 = arith.mulf %104, %105 : vector<4x256xf32>
    %107 = vector.extract_strided_slice %75 {offsets = [0, 32], sizes = [4, 256], strides = [1, 1]} : vector<4x290xf32> to vector<4x256xf32>
    %108 = vector.broadcast %0 : vector<1x256xf32> to vector<4x256xf32>
    %109 = arith.mulf %107, %108 : vector<4x256xf32>
    %110 = vector.extract_strided_slice %73 {offsets = [0, 33], sizes = [4, 256], strides = [1, 1]} : vector<4x290xf32> to vector<4x256xf32>
    %111 = vector.extract_strided_slice %75 {offsets = [0, 33], sizes = [4, 256], strides = [1, 1]} : vector<4x290xf32> to vector<4x256xf32>
    %112 = vector.extract_strided_slice %73 {offsets = [0, 34], sizes = [4, 256], strides = [1, 1]} : vector<4x290xf32> to vector<4x256xf32>
    %113 = vector.broadcast %1 : vector<1x256xf32> to vector<4x256xf32>
    %114 = arith.mulf %112, %113 : vector<4x256xf32>
    %115 = vector.extract_strided_slice %75 {offsets = [0, 34], sizes = [4, 256], strides = [1, 1]} : vector<4x290xf32> to vector<4x256xf32>
    %116 = vector.broadcast %1 : vector<1x256xf32> to vector<4x256xf32>
    %117 = arith.mulf %115, %116 : vector<4x256xf32>
    %118 = tpu.concatenate %78, %81, %82, %83, %86, %89, %92, %95, %96, %97, %100, %103, %106, %109, %110, %111 in 0 : vector<4x256xf32>, vector<4x256xf32>, vector<4x256xf32>, vector<4x256xf32>, vector<4x256xf32>, vector<4x256xf32>, vector<4x256xf32>, vector<4x256xf32>, vector<4x256xf32>, vector<4x256xf32>, vector<4x256xf32>, vector<4x256xf32>, vector<4x256xf32>, vector<4x256xf32>, vector<4x256xf32>, vector<4x256xf32> -> vector<64x256xf32>
    %119 = tpu.concatenate %114, %117 in 0 : vector<4x256xf32>, vector<4x256xf32> -> vector<8x256xf32>
    %120 = tpu.concatenate %118, %119 in 0 : vector<64x256xf32>, vector<8x256xf32> -> vector<72x256xf32>
    %cst_28 = arith.constant dense<0.000000e+00> : vector<4x256xf32>
    %121 = tpu.matmul %4, %120, %cst_28 {dimension_numbers = #tpu.dot_dimension_numbers<[1], [0], [0], [1], [0, 0, 1, 1], [], []>} : vector<4x72xf32>, vector<72x256xf32>, vector<4x256xf32> -> vector<4x256xf32>
    %122 = vector.broadcast %7 : vector<4x1xf32> to vector<4x256xf32>
    %123 = arith.addf %121, %122 : vector<4x256xf32>
    %124 = arith.negf %123 : vector<4x256xf32>
    %125 = math.exp %124 : vector<4x256xf32>
    %cst_29 = arith.constant 1.000000e+00 : f32
    %126 = vector.broadcast %cst_29 : f32 to vector<4x256xf32>
    %127 = arith.addf %126, %125 : vector<4x256xf32>
    %128 = arith.divf %126, %127 : vector<4x256xf32>
    %129 = arith.mulf %41, %128 : vector<4x256xf32>
    %cst_30 = arith.constant 1.000000e+00 : f32
    %130 = vector.broadcast %cst_30 : f32 to vector<4x256xf32>
    %131 = arith.subf %130, %128 : vector<4x256xf32>
    %132 = arith.mulf %71, %131 : vector<4x256xf32>
    %133 = arith.addf %129, %132 : vector<4x256xf32>
    %c0_31 = arith.constant 0 : index
    %c0_32 = arith.constant 0 : index
    %c0_33 = arith.constant 0 : index
    %134 = vector.load %arg11[%c0_31, %c0_32, %c0_33] : memref<2x4x256xf32, #tpu.memory_space<vmem>>, vector<1x4x256xf32>
    %135 = vector.shape_cast %134 : vector<1x4x256xf32> to vector<4x256xf32>
    %136 = vector.shape_cast %133 : vector<4x256xf32> to vector<1x4x256xf32>
    tpu.vector_store %arg11[%c0_31, %c0_32, %c0_33], %136 {strides = array<i32>} : memref<2x4x256xf32, #tpu.memory_space<vmem>>, vector<1x4x256xf32>,
    %c1 = arith.constant 1 : index
    %c0_34 = arith.constant 0 : index
    %c0_35 = arith.constant 0 : index
    %137 = vector.load %arg3[%c1, %c0_34, %c0_35] : memref<2x4x256xf32, #tpu.memory_space<vmem>>, vector<1x4x256xf32>
    %138 = vector.shape_cast %137 : vector<1x4x256xf32> to vector<4x256xf32>
    %c1_36 = arith.constant 1 : index
    %c0_37 = arith.constant 0 : index
    %c0_38 = arith.constant 0 : index
    %139 = vector.load %arg4[%c1_36, %c0_37, %c0_38] : memref<2x4x256xf32, #tpu.memory_space<vmem>>, vector<1x4x256xf32>
    %140 = vector.shape_cast %139 : vector<1x4x256xf32> to vector<4x256xf32>
    %cst_39 = arith.constant 0.000000e+00 : f32
    %141 = vector.broadcast %cst_39 : f32 to vector<4x17xf32>
    %142 = tpu.concatenate %141, %138, %141 in 1 : vector<4x17xf32>, vector<4x256xf32>, vector<4x17xf32> -> vector<4x290xf32>
    %143 = vector.extract_strided_slice %142 {offsets = [0, 0], sizes = [4, 256], strides = [1, 1]} : vector<4x290xf32> to vector<4x256xf32>
    %144 = vector.broadcast %0 : vector<1x256xf32> to vector<4x256xf32>
    %145 = arith.mulf %143, %144 : vector<4x256xf32>
    %146 = vector.extract_strided_slice %142 {offsets = [0, 1], sizes = [4, 256], strides = [1, 1]} : vector<4x290xf32> to vector<4x256xf32>
    %147 = vector.extract_strided_slice %142 {offsets = [0, 2], sizes = [4, 256], strides = [1, 1]} : vector<4x290xf32> to vector<4x256xf32>
    %148 = vector.broadcast %1 : vector<1x256xf32> to vector<4x256xf32>
    %149 = arith.mulf %147, %148 : vector<4x256xf32>
    %150 = vector.extract_strided_slice %142 {offsets = [0, 16], sizes = [4, 256], strides = [1, 1]} : vector<4x290xf32> to vector<4x256xf32>
    %151 = vector.broadcast %0 : vector<1x256xf32> to vector<4x256xf32>
    %152 = arith.mulf %150, %151 : vector<4x256xf32>
    %153 = vector.extract_strided_slice %142 {offsets = [0, 17], sizes = [4, 256], strides = [1, 1]} : vector<4x290xf32> to vector<4x256xf32>
    %154 = vector.extract_strided_slice %142 {offsets = [0, 18], sizes = [4, 256], strides = [1, 1]} : vector<4x290xf32> to vector<4x256xf32>
    %155 = vector.broadcast %1 : vector<1x256xf32> to vector<4x256xf32>
    %156 = arith.mulf %154, %155 : vector<4x256xf32>
    %157 = vector.extract_strided_slice %142 {offsets = [0, 32], sizes = [4, 256], strides = [1, 1]} : vector<4x290xf32> to vector<4x256xf32>
    %158 = vector.broadcast %0 : vector<1x256xf32> to vector<4x256xf32>
    %159 = arith.mulf %157, %158 : vector<4x256xf32>
    %160 = vector.extract_strided_slice %142 {offsets = [0, 33], sizes = [4, 256], strides = [1, 1]} : vector<4x290xf32> to vector<4x256xf32>
    %161 = vector.extract_strided_slice %142 {offsets = [0, 34], sizes = [4, 256], strides = [1, 1]} : vector<4x290xf32> to vector<4x256xf32>
    %162 = vector.broadcast %1 : vector<1x256xf32> to vector<4x256xf32>
    %163 = arith.mulf %161, %162 : vector<4x256xf32>
    %164 = tpu.concatenate %145, %146, %149, %152, %153, %156, %159, %160, %163 in 0 : vector<4x256xf32>, vector<4x256xf32>, vector<4x256xf32>, vector<4x256xf32>, vector<4x256xf32>, vector<4x256xf32>, vector<4x256xf32>, vector<4x256xf32>, vector<4x256xf32> -> vector<36x256xf32>
    %cst_40 = arith.constant dense<0.000000e+00> : vector<4x256xf32>
    %165 = tpu.matmul %2, %164, %cst_40 {dimension_numbers = #tpu.dot_dimension_numbers<[1], [0], [0], [1], [0, 0, 1, 1], [], []>} : vector<4x36xf32>, vector<36x256xf32>, vector<4x256xf32> -> vector<4x256xf32>
    %166 = vector.broadcast %5 : vector<4x1xf32> to vector<4x256xf32>
    %167 = arith.addf %165, %166 : vector<4x256xf32>
    %cst_41 = arith.constant 0.000000e+00 : f32
    %168 = vector.broadcast %cst_41 : f32 to vector<4x256xf32>
    %169 = arith.maximumf %167, %168 : vector<4x256xf32>
    %170 = arith.addf %169, %138 : vector<4x256xf32>
    %cst_42 = arith.constant 0.000000e+00 : f32
    %171 = vector.broadcast %cst_42 : f32 to vector<4x17xf32>
    %172 = tpu.concatenate %171, %140, %171 in 1 : vector<4x17xf32>, vector<4x256xf32>, vector<4x17xf32> -> vector<4x290xf32>
    %173 = vector.extract_strided_slice %172 {offsets = [0, 0], sizes = [4, 256], strides = [1, 1]} : vector<4x290xf32> to vector<4x256xf32>
    %174 = vector.broadcast %0 : vector<1x256xf32> to vector<4x256xf32>
    %175 = arith.mulf %173, %174 : vector<4x256xf32>
    %176 = vector.extract_strided_slice %172 {offsets = [0, 1], sizes = [4, 256], strides = [1, 1]} : vector<4x290xf32> to vector<4x256xf32>
    %177 = vector.extract_strided_slice %172 {offsets = [0, 2], sizes = [4, 256], strides = [1, 1]} : vector<4x290xf32> to vector<4x256xf32>
    %178 = vector.broadcast %1 : vector<1x256xf32> to vector<4x256xf32>
    %179 = arith.mulf %177, %178 : vector<4x256xf32>
    %180 = vector.extract_strided_slice %172 {offsets = [0, 16], sizes = [4, 256], strides = [1, 1]} : vector<4x290xf32> to vector<4x256xf32>
    %181 = vector.broadcast %0 : vector<1x256xf32> to vector<4x256xf32>
    %182 = arith.mulf %180, %181 : vector<4x256xf32>
    %183 = vector.extract_strided_slice %172 {offsets = [0, 17], sizes = [4, 256], strides = [1, 1]} : vector<4x290xf32> to vector<4x256xf32>
    %184 = vector.extract_strided_slice %172 {offsets = [0, 18], sizes = [4, 256], strides = [1, 1]} : vector<4x290xf32> to vector<4x256xf32>
    %185 = vector.broadcast %1 : vector<1x256xf32> to vector<4x256xf32>
    %186 = arith.mulf %184, %185 : vector<4x256xf32>
    %187 = vector.extract_strided_slice %172 {offsets = [0, 32], sizes = [4, 256], strides = [1, 1]} : vector<4x290xf32> to vector<4x256xf32>
    %188 = vector.broadcast %0 : vector<1x256xf32> to vector<4x256xf32>
    %189 = arith.mulf %187, %188 : vector<4x256xf32>
    %190 = vector.extract_strided_slice %172 {offsets = [0, 33], sizes = [4, 256], strides = [1, 1]} : vector<4x290xf32> to vector<4x256xf32>
    %191 = vector.extract_strided_slice %172 {offsets = [0, 34], sizes = [4, 256], strides = [1, 1]} : vector<4x290xf32> to vector<4x256xf32>
    %192 = vector.broadcast %1 : vector<1x256xf32> to vector<4x256xf32>
    %193 = arith.mulf %191, %192 : vector<4x256xf32>
    %194 = tpu.concatenate %175, %176, %179, %182, %183, %186, %189, %190, %193 in 0 : vector<4x256xf32>, vector<4x256xf32>, vector<4x256xf32>, vector<4x256xf32>, vector<4x256xf32>, vector<4x256xf32>, vector<4x256xf32>, vector<4x256xf32>, vector<4x256xf32> -> vector<36x256xf32>
    %cst_43 = arith.constant dense<0.000000e+00> : vector<4x256xf32>
    %195 = tpu.matmul %3, %194, %cst_43 {dimension_numbers = #tpu.dot_dimension_numbers<[1], [0], [0], [1], [0, 0, 1, 1], [], []>} : vector<4x36xf32>, vector<36x256xf32>, vector<4x256xf32> -> vector<4x256xf32>
    %196 = vector.broadcast %6 : vector<4x1xf32> to vector<4x256xf32>
    %197 = arith.addf %195, %196 : vector<4x256xf32>
    %cst_44 = arith.constant 0.000000e+00 : f32
    %198 = vector.broadcast %cst_44 : f32 to vector<4x256xf32>
    %199 = arith.maximumf %197, %198 : vector<4x256xf32>
    %200 = arith.addf %199, %140 : vector<4x256xf32>
    %cst_45 = arith.constant 0.000000e+00 : f32
    %201 = vector.broadcast %cst_45 : f32 to vector<4x17xf32>
    %202 = tpu.concatenate %201, %170, %201 in 1 : vector<4x17xf32>, vector<4x256xf32>, vector<4x17xf32> -> vector<4x290xf32>
    %cst_46 = arith.constant 0.000000e+00 : f32
    %203 = vector.broadcast %cst_46 : f32 to vector<4x17xf32>
    %204 = tpu.concatenate %203, %200, %203 in 1 : vector<4x17xf32>, vector<4x256xf32>, vector<4x17xf32> -> vector<4x290xf32>
    %205 = vector.extract_strided_slice %202 {offsets = [0, 0], sizes = [4, 256], strides = [1, 1]} : vector<4x290xf32> to vector<4x256xf32>
    %206 = vector.broadcast %0 : vector<1x256xf32> to vector<4x256xf32>
    %207 = arith.mulf %205, %206 : vector<4x256xf32>
    %208 = vector.extract_strided_slice %204 {offsets = [0, 0], sizes = [4, 256], strides = [1, 1]} : vector<4x290xf32> to vector<4x256xf32>
    %209 = vector.broadcast %0 : vector<1x256xf32> to vector<4x256xf32>
    %210 = arith.mulf %208, %209 : vector<4x256xf32>
    %211 = vector.extract_strided_slice %202 {offsets = [0, 1], sizes = [4, 256], strides = [1, 1]} : vector<4x290xf32> to vector<4x256xf32>
    %212 = vector.extract_strided_slice %204 {offsets = [0, 1], sizes = [4, 256], strides = [1, 1]} : vector<4x290xf32> to vector<4x256xf32>
    %213 = vector.extract_strided_slice %202 {offsets = [0, 2], sizes = [4, 256], strides = [1, 1]} : vector<4x290xf32> to vector<4x256xf32>
    %214 = vector.broadcast %1 : vector<1x256xf32> to vector<4x256xf32>
    %215 = arith.mulf %213, %214 : vector<4x256xf32>
    %216 = vector.extract_strided_slice %204 {offsets = [0, 2], sizes = [4, 256], strides = [1, 1]} : vector<4x290xf32> to vector<4x256xf32>
    %217 = vector.broadcast %1 : vector<1x256xf32> to vector<4x256xf32>
    %218 = arith.mulf %216, %217 : vector<4x256xf32>
    %219 = vector.extract_strided_slice %202 {offsets = [0, 16], sizes = [4, 256], strides = [1, 1]} : vector<4x290xf32> to vector<4x256xf32>
    %220 = vector.broadcast %0 : vector<1x256xf32> to vector<4x256xf32>
    %221 = arith.mulf %219, %220 : vector<4x256xf32>
    %222 = vector.extract_strided_slice %204 {offsets = [0, 16], sizes = [4, 256], strides = [1, 1]} : vector<4x290xf32> to vector<4x256xf32>
    %223 = vector.broadcast %0 : vector<1x256xf32> to vector<4x256xf32>
    %224 = arith.mulf %222, %223 : vector<4x256xf32>
    %225 = vector.extract_strided_slice %202 {offsets = [0, 17], sizes = [4, 256], strides = [1, 1]} : vector<4x290xf32> to vector<4x256xf32>
    %226 = vector.extract_strided_slice %204 {offsets = [0, 17], sizes = [4, 256], strides = [1, 1]} : vector<4x290xf32> to vector<4x256xf32>
    %227 = vector.extract_strided_slice %202 {offsets = [0, 18], sizes = [4, 256], strides = [1, 1]} : vector<4x290xf32> to vector<4x256xf32>
    %228 = vector.broadcast %1 : vector<1x256xf32> to vector<4x256xf32>
    %229 = arith.mulf %227, %228 : vector<4x256xf32>
    %230 = vector.extract_strided_slice %204 {offsets = [0, 18], sizes = [4, 256], strides = [1, 1]} : vector<4x290xf32> to vector<4x256xf32>
    %231 = vector.broadcast %1 : vector<1x256xf32> to vector<4x256xf32>
    %232 = arith.mulf %230, %231 : vector<4x256xf32>
    %233 = vector.extract_strided_slice %202 {offsets = [0, 32], sizes = [4, 256], strides = [1, 1]} : vector<4x290xf32> to vector<4x256xf32>
    %234 = vector.broadcast %0 : vector<1x256xf32> to vector<4x256xf32>
    %235 = arith.mulf %233, %234 : vector<4x256xf32>
    %236 = vector.extract_strided_slice %204 {offsets = [0, 32], sizes = [4, 256], strides = [1, 1]} : vector<4x290xf32> to vector<4x256xf32>
    %237 = vector.broadcast %0 : vector<1x256xf32> to vector<4x256xf32>
    %238 = arith.mulf %236, %237 : vector<4x256xf32>
    %239 = vector.extract_strided_slice %202 {offsets = [0, 33], sizes = [4, 256], strides = [1, 1]} : vector<4x290xf32> to vector<4x256xf32>
    %240 = vector.extract_strided_slice %204 {offsets = [0, 33], sizes = [4, 256], strides = [1, 1]} : vector<4x290xf32> to vector<4x256xf32>
    %241 = vector.extract_strided_slice %202 {offsets = [0, 34], sizes = [4, 256], strides = [1, 1]} : vector<4x290xf32> to vector<4x256xf32>
    %242 = vector.broadcast %1 : vector<1x256xf32> to vector<4x256xf32>
    %243 = arith.mulf %241, %242 : vector<4x256xf32>
    %244 = vector.extract_strided_slice %204 {offsets = [0, 34], sizes = [4, 256], strides = [1, 1]} : vector<4x290xf32> to vector<4x256xf32>
    %245 = vector.broadcast %1 : vector<1x256xf32> to vector<4x256xf32>
    %246 = arith.mulf %244, %245 : vector<4x256xf32>
    %247 = tpu.concatenate %207, %210, %211, %212, %215, %218, %221, %224, %225, %226, %229, %232, %235, %238, %239, %240 in 0 : vector<4x256xf32>, vector<4x256xf32>, vector<4x256xf32>, vector<4x256xf32>, vector<4x256xf32>, vector<4x256xf32>, vector<4x256xf32>, vector<4x256xf32>, vector<4x256xf32>, vector<4x256xf32>, vector<4x256xf32>, vector<4x256xf32>, vector<4x256xf32>, vector<4x256xf32>, vector<4x256xf32>, vector<4x256xf32> -> vector<64x256xf32>
    %248 = tpu.concatenate %243, %246 in 0 : vector<4x256xf32>, vector<4x256xf32> -> vector<8x256xf32>
    %249 = tpu.concatenate %247, %248 in 0 : vector<64x256xf32>, vector<8x256xf32> -> vector<72x256xf32>
    %cst_47 = arith.constant dense<0.000000e+00> : vector<4x256xf32>
    %250 = tpu.matmul %4, %249, %cst_47 {dimension_numbers = #tpu.dot_dimension_numbers<[1], [0], [0], [1], [0, 0, 1, 1], [], []>} : vector<4x72xf32>, vector<72x256xf32>, vector<4x256xf32> -> vector<4x256xf32>
    %251 = vector.broadcast %7 : vector<4x1xf32> to vector<4x256xf32>
    %252 = arith.addf %250, %251 : vector<4x256xf32>
    %253 = arith.negf %252 : vector<4x256xf32>
    %254 = math.exp %253 : vector<4x256xf32>
    %cst_48 = arith.constant 1.000000e+00 : f32
    %255 = vector.broadcast %cst_48 : f32 to vector<4x256xf32>
    %256 = arith.addf %255, %254 : vector<4x256xf32>
    %257 = arith.divf %255, %256 : vector<4x256xf32>
    %258 = arith.mulf %170, %257 : vector<4x256xf32>
    %cst_49 = arith.constant 1.000000e+00 : f32
    %259 = vector.broadcast %cst_49 : f32 to vector<4x256xf32>
    %260 = arith.subf %259, %257 : vector<4x256xf32>
    %261 = arith.mulf %200, %260 : vector<4x256xf32>
    %262 = arith.addf %258, %261 : vector<4x256xf32>
    %c1_50 = arith.constant 1 : index
    %c0_51 = arith.constant 0 : index
    %c0_52 = arith.constant 0 : index
    %263 = vector.load %arg11[%c1_50, %c0_51, %c0_52] : memref<2x4x256xf32, #tpu.memory_space<vmem>>, vector<1x4x256xf32>
    %264 = vector.shape_cast %263 : vector<1x4x256xf32> to vector<4x256xf32>
    %265 = vector.shape_cast %262 : vector<4x256xf32> to vector<1x4x256xf32>
    tpu.vector_store %arg11[%c1_50, %c0_51, %c0_52], %265 {strides = array<i32>} : memref<2x4x256xf32, #tpu.memory_space<vmem>>, vector<1x4x256xf32>,
    return
  }
  func.func @transform_0(%arg0: i32) -> (i32, i32) {
    %c0_i32 = arith.constant 0 : i32
    %c0_i32_0 = arith.constant 0 : i32
    %c0_i32_1 = arith.constant 0 : i32
    return %c0_i32, %c0_i32_0 : i32, i32
  }
  func.func @transform_1(%arg0: i32) -> (i32, i32) {
    %c0_i32 = arith.constant 0 : i32
    %c0_i32_0 = arith.constant 0 : i32
    %c0_i32_1 = arith.constant 0 : i32
    return %c0_i32, %c0_i32_0 : i32, i32
  }
  func.func @transform_2(%arg0: i32) -> (i32, i32, i32) {
    %c0_i32 = arith.constant 0 : i32
    %c0_i32_0 = arith.constant 0 : i32
    %c0_i32_1 = arith.constant 0 : i32
    return %arg0, %c0_i32, %c0_i32_0 : i32, i32, i32
  }
  func.func @transform_3(%arg0: i32) -> (i32, i32, i32) {
    %c0_i32 = arith.constant 0 : i32
    %c0_i32_0 = arith.constant 0 : i32
    %c0_i32_1 = arith.constant 0 : i32
    return %arg0, %c0_i32, %c0_i32_0 : i32, i32, i32
  }
  func.func @transform_4(%arg0: i32) -> (i32, i32) {
    %c0_i32 = arith.constant 0 : i32
    %c0_i32_0 = arith.constant 0 : i32
    %c0_i32_1 = arith.constant 0 : i32
    return %c0_i32, %c0_i32_0 : i32, i32
  }
  func.func @transform_5(%arg0: i32) -> (i32, i32) {
    %c0_i32 = arith.constant 0 : i32
    %c0_i32_0 = arith.constant 0 : i32
    %c0_i32_1 = arith.constant 0 : i32
    return %c0_i32, %c0_i32_0 : i32, i32
  }
  func.func @transform_6(%arg0: i32) -> (i32, i32) {
    %c0_i32 = arith.constant 0 : i32
    %c0_i32_0 = arith.constant 0 : i32
    %c0_i32_1 = arith.constant 0 : i32
    return %c0_i32, %c0_i32_0 : i32, i32
  }
  func.func @transform_7(%arg0: i32) -> (i32, i32) {
    %c0_i32 = arith.constant 0 : i32
    %c0_i32_0 = arith.constant 0 : i32
    %c0_i32_1 = arith.constant 0 : i32
    return %c0_i32, %c0_i32_0 : i32, i32
  }
  func.func @transform_8(%arg0: i32) -> (i32, i32) {
    %c0_i32 = arith.constant 0 : i32
    %c0_i32_0 = arith.constant 0 : i32
    %c0_i32_1 = arith.constant 0 : i32
    return %c0_i32, %c0_i32_0 : i32, i32
  }
  func.func @transform_9(%arg0: i32) -> (i32, i32) {
    %c0_i32 = arith.constant 0 : i32
    %c0_i32_0 = arith.constant 0 : i32
    %c0_i32_1 = arith.constant 0 : i32
    return %c0_i32, %c0_i32_0 : i32, i32
  }
  func.func @transform_10(%arg0: i32) -> (i32, i32, i32) {
    %c0_i32 = arith.constant 0 : i32
    %c0_i32_0 = arith.constant 0 : i32
    %c0_i32_1 = arith.constant 0 : i32
    return %arg0, %c0_i32, %c0_i32_0 : i32, i32, i32
  }
}

</mosaic_0001>

<bundles_post_ra>
// kernel: lfusion_pallas.1
= control target key start
LH: loop header
LB: loop body
LE: loop exit
PB: predicated region body
PF: predicated region fallthrough
CT: control target
= control target key end

     0   :  { %v59_v0 = vlaneseq  ;;  %s1870_s15 = smov 17   ;;  %s1871_s20 = smov 34   ;;  %vm51_vm0 = vcmask 138240   ;;  %vm132_vm1 = vcmask 277504   ;;  %vm120_vm2 = vcmask 261120   ;;  %s3121_s2 = inlined_call_operand.vmem [shape: f32[2,4,256], index: 2, kind: input, shape index: {}]   ;;  %s3122_s1 = inlined_call_operand.vmem [shape: f32[1,256], index: 1, kind: input, shape index: {}]   ;;  %s3123_s0 = inlined_call_operand.vmem [shape: f32[1,256], index: 0, kind: input, shape index: {}]   ;;  %s3124_s3 = inlined_call_operand.vmem [shape: f32[2,4,256], index: 3, kind: input, shape index: {}]   ;;  %s3125_s7 = inlined_call_operand.vmem [shape: f32[4,1], index: 7, kind: input, shape index: {}]   ;;  %s3126_s5 = inlined_call_operand.vmem [shape: f32[4,1], index: 5, kind: input, shape index: {}]   ;;  %s3127_s4 = inlined_call_operand.vmem [shape: f32[4,36], index: 4, kind: input, shape index: {}]   ;;  %s3128_s6 = inlined_call_operand.vmem [shape: f32[4,36], index: 6, kind: input, shape index: {}]   ;;  %s3129_s9 = inlined_call_operand.vmem [shape: f32[4,1], index: 9, kind: input, shape index: {}]   ;;  %s3130_s8 = inlined_call_operand.vmem [shape: f32[4,72], index: 8, kind: input, shape index: {}]   ;;  %s3131_s10 = inlined_call_operand.vmem [shape: f32[2,4,256], index: 10, kind: output, shape index: {}]  }
   0x1   :  { %v43_v1 = vld [vmem:[%s3121_s2] sm:$0xff]  ;;  %s1872_s21 = smov 18   ;;  %s1873_s22 = smov 32   ;;  %v1816_v13 = vld [vmem:[%s3121_s2 + $0x8] sm:$0xff]  ;;  %vm84_vm3 = vcmask 15360   ;;  %vm108_vm4 = vcmask 146432  }
   0x2   :  { %47 = vrot.lane.b32.xlu0 %v43_v1, %s1870_s15  ;;  %v1945_v2 = vcombine.high %v43_v1, %v43_v1  ;;  %v60_v3 = vshrl.u32 %v59_v0, 7  ;;  %v36_v4 = vld [vmem:[%s3122_s1] sm:$0x3]  ;;  %s1874_s1 = smov 16   ;;  %v1817_v15 = vld [vmem:[%s3124_s3 + $0x8] sm:$0xff]  ;;  %v1978_v16 = vcombine.high %v1816_v13, %v1816_v13  ;;  %s1876_s29 = smov 111  }
   0x3   :  { %v35_v8 = vld [vmem:[%s3123_s0] sm:$0x3]  ;;  %s1875_s0 = smov 2   ;;  %v1983_v17 = vcombine.high %v1817_v15, %v1817_v15  ;;  %s1877_s30 = smov 95   ;;  %vm96_vm5 = vcmask 130048   ;;  %vm249_vm6 = vcmask 769024  }
   0x4   :  { %v61_v5 = vsub.s32 0, %v60_v3  ;;  %v65_v6 = vsub.s32 1, %v60_v3  ;;  %v44_v12 = vld [vmem:[%s3124_s3] sm:$0xff]  ;;  %s1878_s11 = smov 127   ;;  %s1879_s12 = smov 94   ;;  %vm252_vm7 = vcmask 1043456  }
   0x5   :  { %v1970_v14 = vcombine.high %v44_v12, %v44_v12  ;;  %s1880_s13 = smov 126   ;;  %s1881_s14 = smov 96   ;;  %vm235_vm8 = vcmask 777216   ;;  %vm224_vm9 = vcmask 785408   ;;  %vm193_vm10 = vcmask 908288  }
   0x6   :  { %49 = vrot.lane.b32.xlu0 %v1945_v2, %s1870_s15  ;;  %v75_v7 = vrot.slane %v36_v4, %v61_v5  ;;  %v79_v9 = vrot.slane %v36_v4, %v65_v6  ;;  %v1955_v10 = vrot.slane %v35_v8, %v61_v5  ;;  %v1958_v11 = vrot.slane %v35_v8, %v65_v6  ;;  %s1882_s16 = smov 110   ;;  %s1883_s17 = smov 112  }
   0x7   :  { %vm210_vm11 = vcmask 900096   ;;  %vm151_vm12 = vcmask 1039360   ;;  %vm165_vm13 = vcmask 1031168   ;;  %vm182_vm14 = vcmask 916480  }
   0x8   :  { %128 = vrot.lane.b32.xlu1 %v75_v7, %s1871_s20  ;;  %vm266_vm15 = vcmask 293888  }
   0xa   :  { %104 = vrot.lane.b32.xlu0 %v75_v7, %s1872_s21 }
   0xc   :  { %130 = vrot.lane.b32.xlu1 %v79_v9, %s1871_s20 }
   0xe   :  { %116 = vrot.lane.b32.xlu0 %v1955_v10, %s1873_s22 }
  0x10   :  { %106 = vrot.lane.b32.xlu1 %v79_v9, %s1872_s21 }
  0x12   :  { %92 = vrot.lane.b32.xlu0 %v1955_v10, %s1874_s1 }
  0x14   :  { %118 = vrot.lane.b32.xlu1 %v1958_v11, %s1873_s22 }
  0x16   :  { %80 = vrot.lane.b32.xlu0 %v75_v7, %s1875_s0 }
  0x18   :  { %94 = vrot.lane.b32.xlu1 %v1958_v11, %s1874_s1 }
  0x1a   :  { %352 = vrot.lane.b32.xlu0 %v44_v12, %s1870_s15 }
  0x1c   :  { %82 = vrot.lane.b32.xlu1 %v79_v9, %s1875_s0 }
  0x1e   :  { %978 = vrot.lane.b32.xlu0 %v1816_v13, %s1870_s15 }
  0x20   :  { %354 = vrot.lane.b32.xlu1 %v1970_v14, %s1870_s15 }
  0x22   :  { %1199 = vrot.lane.b32.xlu0 %v1817_v15, %s1870_s15 }
  0x24   :  { %980 = vrot.lane.b32.xlu1 %v1978_v16, %s1870_s15 }
  0x28   :  { %1201 = vrot.lane.b32.xlu1 %v1983_v17, %s1870_s15 }
  0x74   :  { %v48_v18 = vpop.permute.xlu0 %47 }
  0x75   :  { %v1988_v19 = vsel %vm51_vm0, 0.0, %v48_v18 }
  0x76   :  { %187 = vrot.lane.b32.xlu1 %v1988_v19, %s1876_s29  ;;  %v142_v20 = vrot.slane %v1988_v19, 4 }
  0x78   :  { %v50_v21 = vpop.permute.xlu0 %49  ;;  %229 = vrot.lane.b32.xlu0 %v142_v20, %s1877_s30 }
  0x79   :  { %v1997_v23 = vsel %vm51_vm0, %v50_v21, 0.0  ;;  %v2029_v36 = vsel %vm51_vm0, %v48_v18, %v50_v21 }
  0x7a   :  { %v1994_v22 = vpop.permute.xlu1 %128  ;;  %v143_v39 = vrot.slane %v2029_v36, 4  ;;  %v144_v41 = vrot.slane %v1997_v23, 4 }
  0x7b   :  { %3151 = vst [vmem:[#allocation2_spill] sm:$0xff] %v1994_v22  ;;  %v137_v43 = vmul.f32 %v1994_v22, %v1988_v19 }
  0x7c   :  { %v1999_v24 = vpop.permute.xlu0 %104  ;;  %191 = vrot.lane.b32.xlu0 %v1997_v23, %s1876_s29 }
  0x7d   :  { %v113_v62 = vmul.f32 %v1999_v24, %v1988_v19 }
  0x7e   :  { %v2003_v25 = vpop.permute.xlu1 %130 }
  0x7f   :  { %3152 = vst [vmem:[#allocation3_spill] sm:$0xff] %v2003_v25  ;;  %v139_v47 = vmul.f32 %v2003_v25, %v1997_v23  ;;  %v2073_v49 = vsel %vm132_vm1, %v1994_v22, %v2003_v25  ;;  %v201_v0 = vrot.slane %v113_v62, 4 }
  0x80   :  { %v2005_v26 = vpop.permute.xlu0 %116  ;;  %3153 = vst [vmem:[#allocation4_spill] sm:$0xff] %v2073_v49  ;;  %v138_v51 = vmul.f32 %v2073_v49, %v2029_v36 }
  0x81   :  { %v125_v53 = vmul.f32 %v2005_v26, %v1988_v19 }
  0x82   :  { %v2007_v27 = vpop.permute.xlu1 %106 }
  0x83   :  { %v115_v59 = vmul.f32 %v2007_v27, %v1997_v23  ;;  %v2138_v13 = vsel %vm108_vm4, %v1999_v24, %v2007_v27 }
  0x84   :  { %v2009_v28 = vpop.permute.xlu0 %92  ;;  %3155 = vst [vmem:[#allocation6_spill] sm:$0xff] %v2138_v13 }
  0x85   :  { %v203_v61 = vrot.slane %v115_v59, 4  ;;  %v101_v6 = vmul.f32 %v2009_v28, %v1988_v19 }
  0x86   :  { %v2011_v29 = vpop.permute.xlu1 %118 }
  0x87   :  { %v127_v50 = vmul.f32 %v2011_v29, %v1997_v23  ;;  %v2083_v52 = vsel %vm120_vm2, %v2005_v26, %v2011_v29  ;;  %v173_v8 = vrot.slane %v101_v6, 4 }
  0x88   :  { %v2013_v30 = vpop.permute.xlu0 %80  ;;  %v126_v54 = vmul.f32 %v2083_v52, %v2029_v36 }
  0x89   :  { %v89_v55 = vmul.f32 %v2013_v30, %v1988_v19 }
  0x8a   :  { %v2015_v31 = vpop.permute.xlu1 %94 }
  0x8b   :  { %v103_v1 = vmul.f32 %v2015_v31, %v1997_v23  ;;  %v2148_v21 = vsel %vm96_vm5, %v2009_v28, %v2015_v31 }
  0x8c   :  { %v353_v32 = vpop.permute.xlu0 %352  ;;  %3156 = vst [vmem:[#allocation7_spill] sm:$0xff] %v2148_v21 }
  0x8d   :  { %v2018_v33 = vsel %vm51_vm0, 0.0, %v353_v32  ;;  %v175_v5 = vrot.slane %v103_v1, 4 }
  0x8e   :  { %v2020_v34 = vpop.permute.xlu1 %82  ;;  %423 = vrot.lane.b32.xlu1 %v2018_v33, %s1876_s29  ;;  %v381_v35 = vrot.slane %v2018_v33, 4  ;;  %v376_v46 = vmul.f32 %v2018_v33, %v1994_v22  ;;  %v373_v63 = vmul.f32 %v2018_v33, %v2005_v26  ;;  %v364_v3 = vmul.f32 %v2018_v33, %v2013_v30 }
  0x8f   :  { %v91_v45 = vmul.f32 %v2020_v34, %v1997_v23  ;;  %v2122_v4 = vsel %vm84_vm3, %v2013_v30, %v2020_v34  ;;  %v370_v18 = vmul.f32 %v2018_v33, %v1999_v24 }
  0x90   :  { %462 = vrot.lane.b32.xlu0 %v381_v35, %s1877_s30  ;;  %3154 = vst [vmem:[#allocation5_spill] sm:$0xff] %v2122_v4  ;;  %v90_v7 = vmul.f32 %v2122_v4, %v2029_v36 }
  0x91   :  { %v436_v23 = vrot.slane %v370_v18, 4 }
  0x92   :  { %v355_v37 = vpop.permute.xlu1 %354  ;;  %189 = vrot.lane.b32.xlu1 %v2029_v36, %s1876_s29 }
  0x93   :  { %v2034_v38 = vsel %vm51_vm0, %v355_v37, 0.0  ;;  %v2042_v40 = vsel %vm51_vm0, %v353_v32, %v355_v37  ;;  %v3132_v37 = vmov 0.0  }
  0x94   :  { %427 = vrot.lane.b32.xlu0 %v2034_v38, %s1876_s29  ;;  %v382_v42 = vrot.slane %v2042_v40, 4  ;;  %v383_v44 = vrot.slane %v2034_v38, 4  ;;  %v366_v48 = vmul.f32 %v2034_v38, %v2020_v34  ;;  %v377_v56 = vmul.f32 %v2042_v40, %v2073_v49  ;;  %338 = vmatprep.mubr.f32.mxu1 %v3132_v37 }
  0x95   :  { %v378_v57 = vmul.f32 %v2034_v38, %v2003_v25  ;;  %v374_v58 = vmul.f32 %v2042_v40, %v2083_v52  ;;  %v375_v60 = vmul.f32 %v2034_v38, %v2011_v29  ;;  %v372_v9 = vmul.f32 %v2034_v38, %v2007_v27  ;;  %940 = vmatprep.mubr.f32.mxu0 %v3132_v37 }
  0x96   :  { %145 = vrot.lane.b32.xlu1 %v142_v20, %s1878_s11  ;;  %v365_v12 = vmul.f32 %v2042_v40, %v2122_v4  ;;  %v114_v20 = vmul.f32 %v2138_v13, %v2029_v36  ;;  %v369_v32 = vmul.f32 %v2034_v38, %v2015_v31 }
  0x97   :  { %v438_v15 = vrot.slane %v372_v9, 4 }
  0x98   :  { %231 = vrot.lane.b32.xlu0 %v143_v39, %s1877_s30 }
  0x9a   :  { %425 = vrot.lane.b32.xlu1 %v2042_v40, %s1876_s29 }
  0x9c   :  { %149 = vrot.lane.b32.xlu0 %v144_v41, %s1878_s11 }
  0x9e   :  { %233 = vrot.lane.b32.xlu1 %v144_v41, %s1877_s30  ;;  %v102_v41 = vmul.f32 %v2148_v21, %v2029_v36 }
  0xa0   :  { %464 = vrot.lane.b32.xlu0 %v382_v42, %s1877_s30 }
  0xa2   :  { %147 = vrot.lane.b32.xlu1 %v143_v39, %s1878_s11  ;;  %v202_v39 = vrot.slane %v114_v20, 4 }
  0xa4   :  { %243 = vrot.lane.b32.xlu0 %v137_v43, %s1879_s12  ;;  %v174_v43 = vrot.slane %v102_v41, 4 }
  0xa6   :  { %466 = vrot.lane.b32.xlu1 %v383_v44, %s1877_s30 }
  0xa8   :  { %163 = vrot.lane.b32.xlu0 %v91_v45, %s1880_s13  ;;  %v371_v45 = vmul.f32 %v2042_v40, %v2138_v13 }
  0xaa   :  { %386 = vrot.lane.b32.xlu1 %v382_v42, %s1878_s11  ;;  %v412_v42 = vrot.slane %v369_v32, 4 }
  0xac   :  { %475 = vrot.lane.b32.xlu0 %v376_v46, %s1879_s12 }
  0xae   :  { %247 = vrot.lane.b32.xlu1 %v139_v47, %s1879_s12  ;;  %v981_v47 = vpop.permute.xlu1 %980 }
  0xb0   :  { %401 = vrot.lane.b32.xlu0 %v366_v48, %s1880_s13  ;;  %v437_v48 = vrot.slane %v371_v45, 4 }
  0xb2   :  { %222 = vrot.lane.b32.xlu1 %v127_v50, %s1881_s14  ;;  %v368_v50 = vmul.f32 %v2042_v40, %v2148_v21  ;;  %v1202_v1 = vpop.permute.xlu1 %1201 }
  0xb4   :  { %245 = vrot.lane.b32.xlu0 %v138_v51, %s1879_s12  ;;  %v979_v51 = vpop.permute.xlu0 %978 }
  0xb6   :  { %218 = vrot.lane.b32.xlu1 %v125_v53, %s1881_s14  ;;  %v2172_v53 = vsel %vm51_vm0, %v979_v51, %v981_v47 }
  0xb7   :  { %v1000_v38 = vmul.f32 %v2172_v53, %v2083_v52  ;;  %v994_v41 = vmul.f32 %v2172_v53, %v2148_v21 }
  0xb8   :  { %220 = vrot.lane.b32.xlu0 %v126_v54, %s1881_s14  ;;  %v411_v54 = vrot.slane %v368_v50, 4  ;;  %v2202_v62 = vpop.permute.xlu0 %1199 }
  0xba   :  { %159 = vrot.lane.b32.xlu1 %v89_v55, %s1880_s13  ;;  %v2178_v55 = vsel %vm51_vm0, %v981_v47, 0.0 }
  0xbb   :  { %v1009_v59 = vrot.slane %v2178_v55, 4  ;;  %v998_v6 = vmul.f32 %v2178_v55, %v2007_v27 }
  0xbc   :  { %477 = vrot.lane.b32.xlu0 %v377_v56, %s1879_s12  ;;  %v1003_v56 = vmul.f32 %v2172_v53, %v2073_v49 }
  0xbe   :  { %479 = vrot.lane.b32.xlu1 %v378_v57, %s1879_s12  ;;  %v1004_v57 = vmul.f32 %v2178_v55, %v2003_v25 }
  0xc0   :  { %454 = vrot.lane.b32.xlu0 %v374_v58, %s1881_s14  ;;  %v1008_v58 = vrot.slane %v2172_v53, 4 }
  0xc2   :  { %456 = vrot.lane.b32.xlu1 %v375_v60, %s1881_s14  ;;  %v2196_v60 = vsel %vm51_vm0, 0.0, %v979_v51 }
  0xc3   :  { %v993_v50 = vmul.f32 %v2196_v60, %v2009_v28 }
  0xc4   :  { %208 = vrot.lane.b32.xlu0 %v203_v61, %s1882_s16  ;;  %v1002_v61 = vmul.f32 %v2196_v60, %v1994_v22 }
  0xc6   :  { %452 = vrot.lane.b32.xlu1 %v373_v63, %s1881_s14  ;;  %v999_v63 = vmul.f32 %v2196_v60, %v2005_v26 }
  0xc8   :  { %204 = vrot.lane.b32.xlu0 %v201_v0, %s1882_s16  ;;  %v1007_v0 = vrot.slane %v2196_v60, 4 }
  0xca   :  { %397 = vrot.lane.b32.xlu1 %v364_v3, %s1880_s13 }
  0xcc   :  { %180 = vrot.lane.b32.xlu0 %v175_v5, %s1883_s17  ;;  %v997_v5 = vmul.f32 %v2172_v53, %v2138_v13 }
  0xce   :  { %161 = vrot.lane.b32.xlu1 %v90_v7, %s1880_s13 }
  0xd0   :  { %176 = vrot.lane.b32.xlu0 %v173_v8, %s1883_s17  ;;  %v1063_v8 = vrot.slane %v997_v5, 4 }
  0xd2   :  { %399 = vrot.lane.b32.xlu1 %v365_v12, %s1880_s13  ;;  %v1064_v12 = vrot.slane %v998_v6, 4 }
  0xd4   :  { %443 = vrot.lane.b32.xlu0 %v438_v15, %s1882_s16  ;;  %v996_v15 = vmul.f32 %v2196_v60, %v1999_v24 }
  0xd6   :  { %384 = vrot.lane.b32.xlu1 %v381_v35, %s1878_s11  ;;  %v367_v35 = vmul.f32 %v2018_v33, %v2009_v28 }
  0xd8   :  { %439 = vrot.lane.b32.xlu0 %v436_v23, %s1882_s16  ;;  %v410_v46 = vrot.slane %v367_v35, 4  ;;  %v1062_v23 = vrot.slane %v996_v15, 4  ;;  %v992_v35 = vmul.f32 %v2178_v55, %v2020_v34  ;;  %v1885_v15 = vmov 0  }
  0xd9   :  { %1845 = vset.pattern.permute.xlu1 %v1885_v15  ;;  %1844 = vset.pattern.permute.xlu0 %v1885_v15 }
  0xda   :  { %206 = vrot.lane.b32.xlu1 %v202_v39, %s1882_s16  ;;  %v991_v39 = vmul.f32 %v2172_v53, %v2122_v4 }
  0xdc   :  { %417 = vrot.lane.b32.xlu0 %v412_v42, %s1883_s17 }
  0xde   :  { %178 = vrot.lane.b32.xlu1 %v174_v43, %s1883_s17  ;;  %v995_v43 = vmul.f32 %v2178_v55, %v2015_v31 }
  0xe0   :  { %413 = vrot.lane.b32.xlu0 %v410_v46, %s1883_s17  ;;  %v1037_v46 = vrot.slane %v994_v41, 4  ;;  %v2302_v41 = vsel %vm51_vm0, 0.0, %v2202_v62 }
  0xe2   :  { %441 = vrot.lane.b32.xlu1 %v437_v48, %s1882_s16  ;;  %v1038_v48 = vrot.slane %v995_v43, 4 }
  0xe4   :  { %388 = vrot.lane.b32.xlu0 %v383_v44, %s1878_s11  ;;  %v1001_v44 = vmul.f32 %v2178_v55, %v2011_v29 }
  0xe6   :  { %415 = vrot.lane.b32.xlu1 %v411_v54, %s1883_s17  ;;  %v990_v54 = vmul.f32 %v2196_v60, %v2013_v30 }
  0xe8   :  { %1103 = vrot.lane.b32.xlu0 %v1003_v56, %s1879_s12  ;;  %v2218_v7 = vpop.permute.xlu1 %187  ;;  %v1036_v56 = vrot.slane %v993_v50, 4 }
  0xea   :  { %1105 = vrot.lane.b32.xlu1 %v1004_v57, %s1879_s12  ;;  %v2209_v3 = vpop.permute.xlu0 %229 }
  0xec   :  { %1080 = vrot.lane.b32.xlu0 %v1000_v38, %s1881_s14 }
  0xee   :  { %1082 = vrot.lane.b32.xlu1 %v1001_v44, %s1881_s14  ;;  %v2222_v9 = vpop.permute.xlu0 %191  ;;  %v2270_v44 = vsel %vm51_vm0, %v2202_v62, %v1202_v1  ;;  %v1220_v62 = vmul.f32 %v2302_v41, %v2005_v26 }
  0xef   :  { %v1224_v6 = vmul.f32 %v2270_v44, %v2073_v49 }
  0xf0   :  { %1090 = vrot.lane.b32.xlu0 %v1008_v58, %s1877_s30 }
  0xf2   :  { %1092 = vrot.lane.b32.xlu1 %v1009_v59, %s1877_s30 }
  0xf4   :  { %1101 = vrot.lane.b32.xlu0 %v1002_v61, %s1879_s12 }
  0xf6   :  { %1078 = vrot.lane.b32.xlu1 %v999_v63, %s1881_s14  ;;  %v2276_v63 = vsel %vm51_vm0, %v1202_v1, 0.0 }
  0xf7   :  { %v3135_v43 = vrot.slane %v2276_v63, 4 }
  0xf8   :  { %1088 = vrot.lane.b32.xlu0 %v1007_v0, %s1877_s30 }
  0xfa   :  { %1051 = vrot.lane.b32.xlu1 %v2172_v53, %s1876_s29 }
  0xfc   :  { %1053 = vrot.lane.b32.xlu0 %v2178_v55, %s1876_s29 }
  0xfe   :  { %1067 = vrot.lane.b32.xlu1 %v1063_v8, %s1882_s16  ;;  %v1225_v8 = vmul.f32 %v2276_v63, %v2003_v25 }
 0x100   :  { %v2227_v18 = vpop.permute.xlu1 %423  ;;  %1069 = vrot.lane.b32.xlu0 %v1064_v12, %s1882_s16 }
 0x102   :  { %1049 = vrot.lane.b32.xlu1 %v2196_v60, %s1876_s29  ;;  %v2232_v20 = vpop.permute.xlu0 %462 }
 0x104   :  { %v2234_v32 = vpop.permute.xlu1 %189  ;;  %1065 = vrot.lane.b32.xlu0 %v1062_v23, %s1882_s16 }
 0x106   :  { %1025 = vrot.lane.b32.xlu1 %v991_v39, %s1880_s13  ;;  %v2242_v42 = vpop.permute.xlu0 %427  ;;  %v3136_v39 = vrot.slane %v2270_v44, 4 }
 0x108   :  { %v2248_v45 = vpop.permute.xlu1 %145  ;;  %1027 = vrot.lane.b32.xlu0 %v992_v35, %s1880_s13 }
 0x10a   :  { %1041 = vrot.lane.b32.xlu1 %v1037_v46, %s1883_s17  ;;  %v2252_v47 = vpop.permute.xlu0 %231 }
 0x10c   :  { %v2256_v51 = vpop.permute.xlu1 %425  ;;  %1043 = vrot.lane.b32.xlu0 %v1038_v48, %s1883_s17  ;;  %v1223_v48 = vmul.f32 %v2302_v41, %v1994_v22 }
 0x10e   :  { %1023 = vrot.lane.b32.xlu1 %v990_v54, %s1880_s13  ;;  %v2262_v55 = vpop.permute.xlu0 %149 }
 0x110   :  { %v234_v57 = vpop.permute.xlu1 %233  ;;  %1039 = vrot.lane.b32.xlu0 %v1036_v56, %s1883_s17  ;;  %v3134_v56 = vrot.slane %v2302_v41, 4 }
 0x112   :  { %1012 = vrot.lane.b32.xlu1 %v1008_v58, %s1878_s11  ;;  %v2266_v38 = vpop.permute.xlu0 %464 }
 0x114   :  { %v2272_v61 = vpop.permute.xlu1 %147  ;;  %1014 = vrot.lane.b32.xlu0 %v1009_v59, %s1878_s11  ;;  %v1221_v59 = vmul.f32 %v2270_v44, %v2083_v52 }
 0x116   :  { %1010 = vrot.lane.b32.xlu1 %v1007_v0, %s1878_s11  ;;  %v244_v5 = vpop.permute.xlu0 %243  ;;  %v1222_v0 = vmul.f32 %v2276_v63, %v2011_v29 }
 0x118   :  { %v2281_v58 = vpop.permute.xlu1 %466  ;;  %1324 = vrot.lane.b32.xlu0 %v1224_v6, %s1879_s12 }
 0x11a   :  { %1326 = vrot.lane.b32.xlu1 %v1225_v8, %s1879_s12  ;;  %v2287_v12 = vpop.permute.xlu0 %163 }
 0x11c   :  { %v2291_v1 = vpop.permute.xlu1 %386  ;;  %1301 = vrot.lane.b32.xlu0 %v1221_v59, %s1881_s14 }
 0x11e   :  { %1303 = vrot.lane.b32.xlu1 %v1222_v0, %s1881_s14  ;;  %v2297_v23 = vpop.permute.xlu0 %475  ;;  %v1218_v0 = vmul.f32 %v2270_v44, %v2138_v13 }
 0x120   :  { %v248_v35 = vpop.permute.xlu1 %247  ;;  %1311 = vrot.lane.b32.xlu0 %v3136_v39, %s1877_s30  ;;  %v1284_v37 = vrot.slane %v1218_v0, 4 }
 0x122   :  { %1313 = vrot.lane.b32.xlu1 %v3135_v43, %s1877_s30  ;;  %v2311_v46 = vpop.permute.xlu0 %401 }
 0x124   :  { %v223_v50 = vpop.permute.xlu1 %222  ;;  %1322 = vrot.lane.b32.xlu0 %v1223_v48, %s1879_s12  ;;  %v237_v48 = vsel %vm235_vm8, %v2252_v47, %v234_v57  ;;  %v1217_v57 = vmul.f32 %v2302_v41, %v1999_v24 }
 0x126   :  { %1299 = vrot.lane.b32.xlu1 %v1220_v62, %s1881_s14  ;;  %v246_v54 = vpop.permute.xlu0 %245  ;;  %v1283_v0 = vrot.slane %v1217_v57, 4  ;;  %v1214_v57 = vmul.f32 %v2302_v41, %v2009_v28 }
 0x127   :  { %v251_v6 = vsel %vm249_vm6, %v246_v54, %v248_v35  ;;  %v250_v8 = vsel %vm249_vm6, %v244_v5, %v246_v54  ;;  %v1219_v5 = vmul.f32 %v2276_v63, %v2007_v27  ;;  %v236_v35 = vsel %vm235_vm8, %v2209_v3, %v2252_v47 }
 0x128   :  { %v219_v59 = vpop.permute.xlu1 %218  ;;  %1309 = vrot.lane.b32.xlu0 %v3134_v56, %s1877_s30  ;;  %1807 = vmatprep.subr.msk.mxu1 %vm252_vm7, %v251_v6  ;;  %v1257_v39 = vrot.slane %v1214_v57, 4  ;;  %v3159_v57 = vrot.slane %v2302_v41, 4 }
 0x129   :  { %1808 = vmatpush1.msk.msra.mxu1 %vm252_vm7, %v250_v8  ;;  %v1285_v47 = vrot.slane %v1219_v5, 4 }
 0x12a   :  { %1272 = vrot.lane.b32.xlu1 %v2270_v44, %s1876_s29  ;;  %v221_v15 = vpop.permute.xlu0 %220 }
 0x12b   :  { %v225_v62 = vsel %vm224_vm9, %v219_v59, %v221_v15  ;;  %v226_v54 = vsel %vm224_vm9, %v221_v15, %v223_v50 }
 0x12c   :  { %v2340_v6 = vpop.permute.xlu1 %159  ;;  %1274 = vrot.lane.b32.xlu0 %v2276_v63, %s1876_s29  ;;  %v260_v8 = vsel %vm252_vm7, %v226_v54, %v237_v48  ;;  %v259_v56 = vsel %vm252_vm7, %v225_v62, %v236_v35  ;;  %v1213_v35 = vmul.f32 %v2276_v63, %v2020_v34  ;;  %v1216_v48 = vmul.f32 %v2276_v63, %v2015_v31 }
 0x12d   :  { %298 = vmatprep.subr.mxu1 %v260_v8 }
 0x12e   :  { %1288 = vrot.lane.b32.xlu1 %v1284_v37, %s1882_s16  ;;  %299 = vmatpush1.msra.mxu1 %v259_v56  ;;  %v2347_v3 = vpop.permute.xlu0 %477  ;;  %v1212_v37 = vmul.f32 %v2270_v44, %v2122_v4  ;;  %v1215_v56 = vmul.f32 %v2270_v44, %v2148_v21 }
 0x130   :  { %v2351_v50 = vpop.permute.xlu1 %479  ;;  %1290 = vrot.lane.b32.xlu0 %v1285_v47, %s1882_s16  ;;  %v1258_v54 = vrot.slane %v1215_v56, 4  ;;  %v1259_v47 = vrot.slane %v1216_v48, 4  ;;  %v3157_v56 = vrot.slane %v2270_v44, 4 }
 0x132   :  { %1270 = vrot.lane.b32.xlu1 %v2302_v41, %s1876_s29  ;;  %v2356_v59 = vpop.permute.xlu0 %454 }
 0x134   :  { %v2358_v15 = vpop.permute.xlu1 %456  ;;  %1286 = vrot.lane.b32.xlu0 %v1283_v0, %s1882_s16 }
 0x136   :  { %1246 = vrot.lane.b32.xlu1 %v1212_v37, %s1880_s13  ;;  %v209_v5 = vpop.permute.xlu0 %208  ;;  %v1211_v37 = vmul.f32 %v2302_v41, %v2013_v30 }
 0x138   :  { %v2370_v62 = vpop.permute.xlu1 %452  ;;  %1248 = vrot.lane.b32.xlu0 %v1213_v35, %s1880_s13 }
 0x13a   :  { %1262 = vrot.lane.b32.xlu1 %v1258_v54, %s1883_s17  ;;  %v205_v8 = vpop.permute.xlu0 %204 }
 0x13c   :  { %v2376_v0 = vpop.permute.xlu1 %397  ;;  %1264 = vrot.lane.b32.xlu0 %v1259_v47, %s1883_s17  ;;  %v3158_v47 = vrot.slane %v2276_v63, 4 }
 0x13e   :  { %1244 = vrot.lane.b32.xlu1 %v1211_v37, %s1880_s13  ;;  %v181_v43 = vpop.permute.xlu0 %180  ;;  %v41_v37 = vld [vmem:[%s3125_s7] sm:$0xf] }
 0x140   :  { %v162_v35 = vpop.permute.xlu1 %161  ;;  %1260 = vrot.lane.b32.xlu0 %v1257_v39, %s1883_s17 }
 0x142   :  { %1233 = vrot.lane.b32.xlu1 %v3157_v56, %s1878_s11  ;;  %v177_v48 = vpop.permute.xlu0 %176  ;;  %v40_v56 = vld [vmem:[%s3126_s5] sm:$0xf] }
 0x144   :  { %v2386_v54 = vpop.permute.xlu1 %399  ;;  %1235 = vrot.lane.b32.xlu0 %v3158_v47, %s1878_s11  ;;  %v194_v47 = vsel %vm193_vm10, %v2218_v7, %v2234_v32  ;;  %v153_v7 = vsel %vm151_vm12, %v2272_v61, %v2262_v55 }
 0x146   :  { %1231 = vrot.lane.b32.xlu1 %v3159_v57, %s1878_s11  ;;  %v444_v39 = vpop.permute.xlu0 %443  ;;  %v195_v57 = vsel %vm193_vm10, %v2234_v32, %v2222_v9  ;;  %v166_v9 = vsel %vm165_vm13, %v2340_v6, %v162_v35  ;;  %v167_v32 = vsel %vm165_vm13, %v162_v35, %v2287_v12  ;;  %v69_v12 = vmul.f32 %v1955_v10, %v1988_v19 }
 0x147   :  { %v482_v19 = vsel %vm249_vm6, %v2347_v3, %v2351_v50  ;;  %v468_v50 = vsel %vm235_vm8, %v2232_v20, %v2266_v38 }
 0x148   :  { %v2400_v49 = vpop.permute.xlu1 %384  ;;  %493 = vperm.xlu0 %1844, %v41_v37  }
 0x14a   :  { %v440_v25 = vpop.permute.xlu0 %439  ;;  %263 = vperm.xlu1 %1845, %v40_v56  }
 0x14c   :  { %v207_v63 = vpop.permute.xlu1 %206 }
 0x14d   :  { %v211_v22 = vsel %vm210_vm11, %v205_v8, %v207_v63  ;;  %v212_v4 = vsel %vm210_vm11, %v207_v63, %v209_v5  ;;  %v70_v63 = vmul.f32 %v1958_v11, %v2029_v36 }
 0x14e   :  { %v418_v37 = vpop.permute.xlu0 %417  ;;  %v258_v21 = vsel %vm252_vm7, %v195_v57, %v212_v4  ;;  %v257_v56 = vsel %vm252_vm7, %v194_v47, %v211_v22  ;;  %v152_v22 = vsel %vm151_vm12, %v2248_v45, %v2272_v61  ;;  %v2434_v45 = vld [vmem:[%s3127_s4] sm:$0xf]  ;;  %v459_v61 = vsel %vm224_vm9, %v2356_v59, %v2358_v15 }
 0x14f   :  { %300 = vmatprep.subr.mxu1 %v258_v21  ;;  %v253_v36 = vsel %vm252_vm7, %v69_v12, %v152_v22  ;;  %v481_v15 = vsel %vm249_vm6, %v2297_v23, %v2347_v3  ;;  %v3160_v57 = vmov 0.0   ;;  %v430_v23 = vsel %vm193_vm10, %v2256_v51, %v2242_v42 }
 0x150   :  { %v179_v13 = vpop.permute.xlu1 %178  ;;  %301 = vmatpush1.msra.mxu1 %v257_v56 }
 0x151   :  { %v183_v5 = vsel %vm182_vm14, %v177_v48, %v179_v13  ;;  %v184_v4 = vsel %vm182_vm14, %v179_v13, %v181_v43  ;;  %v254_v13 = vsel %vm252_vm7, %v70_v63, %v153_v7  ;;  %v458_v43 = vsel %vm224_vm9, %v2370_v62, %v2356_v59 }
 0x152   :  { %v414_v21 = vpop.permute.xlu0 %413  ;;  %v256_v8 = vsel %vm252_vm7, %v167_v32, %v184_v4  ;;  %v255_v55 = vsel %vm252_vm7, %v166_v9, %v183_v5  ;;  %v469_v48 = vsel %vm235_vm8, %v2266_v38, %v2281_v58  ;;  %v404_v7 = vsel %vm165_vm13, %v2386_v54, %v2311_v46 }
 0x153   :  { %302 = vmatprep.subr.mxu1 %v256_v8  ;;  %v490_v58 = vsel %vm252_vm7, %v459_v61, %v469_v48  ;;  %v363_v46 = vmul.f32 %v2042_v40, %v1958_v11  ;;  %v362_v4 = vmul.f32 %v2018_v33, %v1955_v10 }
 0x154   :  { %v442_v6 = vpop.permute.xlu1 %441  ;;  %303 = vmatpush1.msra.mxu1 %v255_v55 }
 0x155   :  { %304 = vmatprep.subr.mxu1 %v254_v13  ;;  %v446_v47 = vsel %vm210_vm11, %v442_v6, %v444_v39  ;;  %v445_v59 = vsel %vm210_vm11, %v440_v25, %v442_v6  ;;  %v489_v39 = vsel %vm252_vm7, %v458_v43, %v468_v50  ;;  %v429_v25 = vsel %vm193_vm10, %v2227_v18, %v2256_v51 }
 0x156   :  { %v389_v35 = vpop.permute.xlu0 %388  ;;  %305 = vmatpush1.msra.mxu1 %v253_v36  ;;  %v488_v56 = vsel %vm252_vm7, %v430_v23, %v446_v47  ;;  %v403_v18 = vsel %vm165_vm13, %v2376_v0, %v2386_v54  ;;  %v390_v51 = vsel %vm151_vm12, %v2400_v49, %v2291_v1  ;;  %v2495_v49 = vld [vmem:[%s3128_s6] sm:$0xf] }
 0x157   :  { %1809 = vmatmul.mubr.msk.f32.vlgmr.msra.gmra.mxu1 %vm266_vm15, %v2434_v45  ;;  %1810 = vmatprep.subr.msk.mxu1 %vm252_vm7, %v482_v19  ;;  %v391_v42 = vsel %vm151_vm12, %v2291_v1, %v389_v35  ;;  %v483_v1 = vsel %vm252_vm7, %v362_v4, %v390_v51 }
 0x158   :  { %v416_v62 = vpop.permute.xlu1 %415  ;;  %1811 = vmatpush1.msk.msra.mxu1 %vm252_vm7, %v481_v15  ;;  %567 = vmatprep.mubr.f32.mxu1 %v3160_v57  ;;  %v484_v0 = vsel %vm252_vm7, %v363_v46, %v391_v42 }
 0x159   :  { %v420_v3 = vsel %vm182_vm14, %v416_v62, %v418_v37  ;;  %527 = vmatprep.subr.mxu1 %v490_v58  ;;  %v419_v20 = vsel %vm182_vm14, %v414_v21, %v416_v62  ;;  %v487_v37 = vsel %vm252_vm7, %v429_v25, %v445_v59 }
 0x15a   :  { %v1104_v38 = vpop.permute.xlu0 %1103  ;;  %528 = vmatpush1.msra.mxu1 %v489_v39  ;;  %v486_v32 = vsel %vm252_vm7, %v404_v7, %v420_v3  ;;  %v485_v5 = vsel %vm252_vm7, %v403_v18, %v419_v20 }
 0x15b   :  { %529 = vmatprep.subr.mxu1 %v488_v56 }
 0x15c   :  { %v1106_v9 = vpop.permute.xlu1 %1105  ;;  %530 = vmatpush1.msra.mxu1 %v487_v37 }
 0x15d   :  { %531 = vmatprep.subr.mxu1 %v486_v32  ;;  %v1108_v40 = vsel %vm249_vm6, %v1104_v38, %v1106_v9 }
 0x15e   :  { %v1081_v22 = vpop.permute.xlu0 %1080  ;;  %532 = vmatpush1.msra.mxu1 %v485_v5 }
 0x15f   :  { %533 = vmatprep.subr.mxu1 %v484_v0  ;;  %v989_v0 = vmul.f32 %v2172_v53, %v1958_v11 }
 0x160   :  { %v1083_v54 = vpop.permute.xlu1 %1082  ;;  %534 = vmatpush1.msra.mxu1 %v483_v1 }
 0x161   :  { %1812 = vmatmul.mubr.msk.f32.vlgmr.msra.gmra.mxu1 %vm266_vm15, %v2495_v49  ;;  %1818 = vmatprep.subr.msk.mxu1 %vm252_vm7, %v1108_v40  ;;  %v1085_v63 = vsel %vm224_vm9, %v1081_v22, %v1083_v54 }
 0x162   :  { %v1091_v33 = vpop.permute.xlu0 %1090  ;;  %1185 = vmatprep.mubr.f32.mxu1 %v3160_v57 }
 0x164   :  { %v1093_v21 = vpop.permute.xlu1 %1092 }
 0x165   :  { %v1095_v8 = vsel %vm235_vm8, %v1091_v33, %v1093_v21 }
 0x166   :  { %v1102_v55 = vpop.permute.xlu0 %1101  ;;  %v1116_v13 = vsel %vm252_vm7, %v1085_v63, %v1095_v8 }
 0x167   :  { %v1107_v12 = vsel %vm249_vm6, %v1102_v55, %v1104_v38 }
 0x168   :  { %v1079_v6 = vpop.permute.xlu1 %1078  ;;  %1819 = vmatpush1.msk.msra.mxu1 %vm252_vm7, %v1107_v12 }
 0x169   :  { %1145 = vmatprep.subr.mxu1 %v1116_v13  ;;  %v1084_v36 = vsel %vm224_vm9, %v1079_v6, %v1081_v22 }
 0x16a   :  { %v1089_v61 = vpop.permute.xlu0 %1088 }
 0x16b   :  { %v1094_v19 = vsel %vm235_vm8, %v1089_v61, %v1091_v33  ;;  %v988_v33 = vmul.f32 %v2196_v60, %v1955_v10 }
 0x16c   :  { %v1052_v43 = vpop.permute.xlu1 %1051  ;;  %v1115_v35 = vsel %vm252_vm7, %v1084_v36, %v1094_v19 }
 0x16d   :  { %1146 = vmatpush1.msra.mxu1 %v1115_v35 }
 0x16e   :  { %v1054_v48 = vpop.permute.xlu0 %1053 }
 0x16f   :  { %v1056_v50 = vsel %vm193_vm10, %v1052_v43, %v1054_v48 }
 0x170   :  { %v1068_v15 = vpop.permute.xlu1 %1067 }
 0x172   :  { %v1070_v47 = vpop.permute.xlu0 %1069 }
 0x173   :  { %v1072_v59 = vsel %vm210_vm11, %v1068_v15, %v1070_v47 }
 0x174   :  { %v1050_v62 = vpop.permute.xlu1 %1049  ;;  %v1114_v58 = vsel %vm252_vm7, %v1056_v50, %v1072_v59 }
 0x175   :  { %1147 = vmatprep.subr.mxu1 %v1114_v58  ;;  %v1055_v3 = vsel %vm193_vm10, %v1050_v62, %v1052_v43 }
 0x176   :  { %v1066_v23 = vpop.permute.xlu0 %1065 }
 0x177   :  { %v1071_v39 = vsel %vm210_vm11, %v1066_v23, %v1068_v15 }
 0x178   :  { %v1026_v25 = vpop.permute.xlu1 %1025  ;;  %v1113_v20 = vsel %vm252_vm7, %v1055_v3, %v1071_v39 }
 0x179   :  { %1148 = vmatpush1.msra.mxu1 %v1113_v20 }
 0x17a   :  { %v1028_v38 = vpop.permute.xlu0 %1027 }
 0x17b   :  { %v1030_v42 = vsel %vm165_vm13, %v1026_v25, %v1028_v38 }
 0x17c   :  { %v1042_v56 = vpop.permute.xlu1 %1041 }
 0x17e   :  { %v1044_v7 = vpop.permute.xlu0 %1043 }
 0x17f   :  { %v1046_v37 = vsel %vm182_vm14, %v1042_v56, %v1044_v7 }
 0x180   :  { %v1024_v18 = vpop.permute.xlu1 %1023  ;;  %v1112_v51 = vsel %vm252_vm7, %v1030_v42, %v1046_v37 }
 0x181   :  { %1149 = vmatprep.subr.mxu1 %v1112_v51  ;;  %v1029_v32 = vsel %vm165_vm13, %v1024_v18, %v1026_v25 }
 0x182   :  { %v1040_v9 = vpop.permute.xlu0 %1039 }
 0x183   :  { %v1045_v46 = vsel %vm182_vm14, %v1040_v9, %v1042_v56 }
 0x184   :  { %v1013_v5 = vpop.permute.xlu1 %1012  ;;  %v1111_v4 = vsel %vm252_vm7, %v1029_v32, %v1045_v46 }
 0x185   :  { %1150 = vmatpush1.msra.mxu1 %v1111_v4 }
 0x186   :  { %v1015_v22 = vpop.permute.xlu0 %1014 }
 0x187   :  { %v1017_v1 = vsel %vm151_vm12, %v1013_v5, %v1015_v22 }
 0x188   :  { %v1011_v40 = vpop.permute.xlu1 %1010  ;;  %v1110_v54 = vsel %vm252_vm7, %v989_v0, %v1017_v1 }
 0x189   :  { %v1016_v21 = vsel %vm151_vm12, %v1011_v40, %v1013_v5  ;;  %1151 = vmatprep.subr.mxu1 %v1110_v54 }
 0x18a   :  { %v1325_v8 = vpop.permute.xlu0 %1324  ;;  %v1109_v55 = vsel %vm252_vm7, %v988_v33, %v1016_v21  ;;  %v1210_v21 = vmul.f32 %v2270_v44, %v1958_v11 }
 0x18b   :  { %1152 = vmatpush1.msra.mxu1 %v1109_v55 }
 0x18c   :  { %v1327_v63 = vpop.permute.xlu1 %1326  ;;  %1820 = vmatmul.mubr.msk.f32.vlgmr.msra.gmra.mxu1 %vm266_vm15, %v2434_v45 }
 0x18d   :  { %v1329_v53 = vsel %vm249_vm6, %v1325_v8, %v1327_v63  ;;  %1406 = vmatprep.mubr.f32.mxu1 %v3160_v57 }
 0x18e   :  { %v1302_v12 = vpop.permute.xlu0 %1301  ;;  %1821 = vmatprep.subr.msk.mxu1 %vm252_vm7, %v1329_v53  ;;  %v1209_v53 = vmul.f32 %v2302_v41, %v1955_v10 }
 0x190   :  { %v1304_v6 = vpop.permute.xlu1 %1303 }
 0x191   :  { %v1306_v19 = vsel %vm224_vm9, %v1302_v12, %v1304_v6 }
 0x192   :  { %v1312_v60 = vpop.permute.xlu0 %1311 }
 0x194   :  { %v1314_v13 = vpop.permute.xlu1 %1313 }
 0x195   :  { %v1316_v61 = vsel %vm235_vm8, %v1312_v60, %v1314_v13 }
 0x196   :  { %v1323_v36 = vpop.permute.xlu0 %1322  ;;  %v1337_v45 = vsel %vm252_vm7, %v1306_v19, %v1316_v61 }
 0x197   :  { %v1328_v43 = vsel %vm249_vm6, %v1323_v36, %v1325_v8 }
 0x198   :  { %v1300_v35 = vpop.permute.xlu1 %1299  ;;  %1822 = vmatpush1.msk.msra.mxu1 %vm252_vm7, %v1328_v43  ;;  %v1866_v43 = vld [vmem:[%s3121_s2] sm:$0xff] }
 0x199   :  { %1366 = vmatprep.subr.mxu1 %v1337_v45  ;;  %v1305_v15 = vsel %vm224_vm9, %v1300_v35, %v1302_v12 }
 0x19a   :  { %v1310_v48 = vpop.permute.xlu0 %1309 }
 0x19b   :  { %v1315_v47 = vsel %vm235_vm8, %v1310_v48, %v1312_v60 }
 0x19c   :  { %v1273_v50 = vpop.permute.xlu1 %1272  ;;  %v1336_v59 = vsel %vm252_vm7, %v1305_v15, %v1315_v47 }
 0x19d   :  { %1367 = vmatpush1.msra.mxu1 %v1336_v59 }
 0x19e   :  { %v1275_v62 = vpop.permute.xlu0 %1274 }
 0x19f   :  { %v1277_v3 = vsel %vm193_vm10, %v1273_v50, %v1275_v62  ;;  %v1867_v62 = vld [vmem:[%s3124_s3] sm:$0xff] }
 0x1a0   :  { %v1289_v58 = vpop.permute.xlu1 %1288 }
 0x1a2   :  { %v1291_v23 = vpop.permute.xlu0 %1290 }
 0x1a3   :  { %v1293_v39 = vsel %vm210_vm11, %v1289_v58, %v1291_v23 }
 0x1a4   :  { %v1271_v25 = vpop.permute.xlu1 %1270  ;;  %v1335_v20 = vsel %vm252_vm7, %v1277_v3, %v1293_v39 }
 0x1a5   :  { %1368 = vmatprep.subr.mxu1 %v1335_v20  ;;  %v1276_v56 = vsel %vm193_vm10, %v1271_v25, %v1273_v50 }
 0x1a6   :  { %v1287_v38 = vpop.permute.xlu0 %1286 }
 0x1a7   :  { %v1292_v7 = vsel %vm210_vm11, %v1287_v38, %v1289_v58 }
 0x1a8   :  { %v1247_v42 = vpop.permute.xlu1 %1246  ;;  %v1334_v37 = vsel %vm252_vm7, %v1276_v56, %v1292_v7  ;;  %v1868_v56 = vld [vmem:[%s3121_s2 + $0x8] sm:$0xff] }
 0x1a9   :  { %1369 = vmatpush1.msra.mxu1 %v1334_v37 }
 0x1aa   :  { %v1249_v18 = vpop.permute.xlu0 %1248 }
 0x1ab   :  { %v1251_v32 = vsel %vm165_vm13, %v1247_v42, %v1249_v18 }
 0x1ac   :  { %v1263_v51 = vpop.permute.xlu1 %1262 }
 0x1ae   :  { %v1265_v9 = vpop.permute.xlu0 %1264 }
 0x1af   :  { %v1267_v46 = vsel %vm182_vm14, %v1263_v51, %v1265_v9 }
 0x1b0   :  { %v1245_v5 = vpop.permute.xlu1 %1244  ;;  %v1333_v4 = vsel %vm252_vm7, %v1251_v32, %v1267_v46  ;;  %v1869_v46 = vld [vmem:[%s3124_s3 + $0x8] sm:$0xff] }
 0x1b1   :  { %1370 = vmatprep.subr.mxu1 %v1333_v4  ;;  %v1250_v0 = vsel %vm165_vm13, %v1245_v5, %v1247_v42 }
 0x1b2   :  { %v1261_v22 = vpop.permute.xlu0 %1260 }
 0x1b3   :  { %v1266_v1 = vsel %vm182_vm14, %v1261_v22, %v1263_v51 }
 0x1b4   :  { %v1234_v40 = vpop.permute.xlu1 %1233  ;;  %v1332_v54 = vsel %vm252_vm7, %v1250_v0, %v1266_v1 }
 0x1b5   :  { %1371 = vmatpush1.msra.mxu1 %v1332_v54 }
 0x1b6   :  { %v1236_v33 = vpop.permute.xlu0 %1235 }
 0x1b7   :  { %v1238_v8 = vsel %vm151_vm12, %v1234_v40, %v1236_v33 }
 0x1b8   :  { %v1232_v55 = vpop.permute.xlu1 %1231  ;;  %v1331_v63 = vsel %vm252_vm7, %v1210_v21, %v1238_v8 }
 0x1b9   :  { %v1237_v12 = vsel %vm151_vm12, %v1232_v55, %v1234_v40  ;;  %1372 = vmatprep.subr.mxu1 %v1331_v63 }
 0x1ba   :  { %v1330_v6 = vsel %vm252_vm7, %v1209_v53, %v1237_v12 }
 0x1bb   :  { %1373 = vmatpush1.msra.mxu1 %v1330_v6 }
 0x1bc   :  { %1823 = vmatmul.mubr.msk.f32.vlgmr.msra.gmra.mxu1 %vm266_vm15, %v2495_v49 }
 0x1c3   :  { %v494_v49 = vpop.permute.xlu0 %493 }
 0x1c5   :  { %v264_v60 = vpop.permute.xlu1 %263 }
 0x217   :  { %v340_v13 = vpop.f32.mrf.mxu1 }
 0x218   :  { %v341_v44 = vadd.f32 %v340_v13, %v264_v60 }
 0x219   :  { %v342_v61 = vpop.f32.mrf.mxu1 }
 0x21a   :  { %v345_v36 = vmax.f32 %v341_v44, 0.0  ;;  %v343_v19 = vadd.f32 %v342_v61, %v264_v60 }
 0x21c   :  { %v2569_v41 = vadd.f32 %v1866_v43, %v345_v36  ;;  %v346_v35 = vmax.f32 %v343_v19, 0.0 }
 0x21e   :  { %v2572_v45 = vadd.f32 %v346_v35, %v1945_v2  ;;  %581 = vrot.lane.b32.xlu1 %v2569_v41, %s1870_s15 }
 0x220   :  { %583 = vrot.lane.b32.xlu0 %v2572_v45, %s1870_s15 }
 0x221   :  { %v569_v48 = vpop.f32.mrf.mxu1 }
 0x222   :  { %v570_v15 = vadd.f32 %v569_v48, %v494_v49 }
 0x223   :  { %v571_v47 = vpop.f32.mrf.mxu1 }
 0x224   :  { %v574_v50 = vmax.f32 %v570_v15, 0.0  ;;  %v572_v59 = vadd.f32 %v571_v47, %v494_v49 }
 0x226   :  { %v2581_v58 = vadd.f32 %v1867_v62, %v574_v50  ;;  %v575_v2 = vmax.f32 %v572_v59, 0.0 }
 0x228   :  { %v2584_v23 = vadd.f32 %v575_v2, %v1970_v14  ;;  %593 = vrot.lane.b32.xlu1 %v2581_v58, %s1870_s15  ;;  %v3163_v2 = vld [vmem:[#allocation6_spill] sm:$0xff] }
 0x22a   :  { %595 = vrot.lane.b32.xlu0 %v2584_v23, %s1870_s15 }
 0x24c   :  { %v1187_v3 = vpop.f32.mrf.mxu1 }
 0x24d   :  { %v1188_v39 = vadd.f32 %v1187_v3, %v264_v60 }
 0x24e   :  { %v1189_v25 = vpop.f32.mrf.mxu1 }
 0x24f   :  { %v1192_v20 = vmax.f32 %v1188_v39, 0.0  ;;  %v1190_v38 = vadd.f32 %v1189_v25, %v264_v60 }
 0x251   :  { %v2593_v7 = vadd.f32 %v1868_v56, %v1192_v20  ;;  %v1193_v42 = vmax.f32 %v1190_v38, 0.0  ;;  %v3164_v20 = vld [vmem:[#allocation7_spill] sm:$0xff] }
 0x253   :  { %v2596_v14 = vadd.f32 %v1193_v42, %v1978_v16  ;;  %1420 = vrot.lane.b32.xlu1 %v2593_v7, %s1870_s15  ;;  %v3165_v42 = vld [vmem:[#allocation5_spill] sm:$0xff] }
 0x255   :  { %3161 = vst [vmem:[#allocation8_spill] sm:$0xff] %v2596_v14  ;;  %1422 = vrot.lane.b32.xlu0 %v2596_v14, %s1870_s15 }
 0x27c   :  { %v1408_v37 = vpop.f32.mrf.mxu1 }
 0x27d   :  { %v1409_v18 = vadd.f32 %v1408_v37, %v494_v49 }
 0x27e   :  { %v1410_v51 = vpop.f32.mrf.mxu1 }
 0x27f   :  { %v1413_v9 = vmax.f32 %v1409_v18, 0.0  ;;  %v1411_v32 = vadd.f32 %v1410_v51, %v494_v49 }
 0x281   :  { %v2605_v5 = vadd.f32 %v1869_v46, %v1413_v9  ;;  %v1414_v4 = vmax.f32 %v1411_v32, 0.0 }
 0x283   :  { %v2608_v16 = vadd.f32 %v1414_v4, %v1983_v17  ;;  %1432 = vrot.lane.b32.xlu1 %v2605_v5, %s1870_s15 }
 0x285   :  { %3162 = vst [vmem:[#allocation9_spill] sm:$0xff] %v2608_v16  ;;  %1434 = vrot.lane.b32.xlu0 %v2608_v16, %s1870_s15 }
 0x290   :  { %v582_v22 = vpop.permute.xlu1 %581 }
 0x291   :  { %v2615_v0 = vsel %vm51_vm0, 0.0, %v582_v22 }
 0x292   :  { %v584_v1 = vpop.permute.xlu0 %583  ;;  %806 = vrot.lane.b32.xlu0 %v2615_v0, %s1877_s30  ;;  %v625_v8 = vmul.f32 %v2615_v0, %v2005_v26  ;;  %v619_v12 = vmul.f32 %v2615_v0, %v1999_v24  ;;  %v603_v13 = vmul.f32 %v2615_v0, %v1955_v10  ;;  %v613_v48 = vmul.f32 %v2615_v0, %v2009_v28 }
 0x293   :  { %v2620_v40 = vsel %vm51_vm0, %v582_v22, %v584_v1  ;;  %v2627_v17 = vsel %vm51_vm0, %v584_v1, 0.0  ;;  %v607_v47 = vmul.f32 %v2615_v0, %v2013_v30  ;;  %v3166_v22 = vld [vmem:[#allocation2_spill] sm:$0xff] }
 0x294   :  { %808 = vrot.lane.b32.xlu1 %v2620_v40, %s1877_s30  ;;  %v627_v21 = vmul.f32 %v2627_v17, %v2011_v29  ;;  %v621_v53 = vmul.f32 %v2627_v17, %v2007_v27  ;;  %v615_v44 = vmul.f32 %v2627_v17, %v2015_v31  ;;  %v604_v61 = vmul.f32 %v2620_v40, %v1958_v11 }
 0x295   :  { %v609_v49 = vmul.f32 %v2627_v17, %v2020_v34  ;;  %v626_v50 = vmul.f32 %v2620_v40, %v2083_v52  ;;  %v620_v3 = vmul.f32 %v2620_v40, %v3163_v2  ;;  %v614_v38 = vmul.f32 %v2620_v40, %v3164_v20 }
 0x296   :  { %728 = vrot.lane.b32.xlu0 %v2615_v0, %s1876_s29  ;;  %v608_v37 = vmul.f32 %v2620_v40, %v3165_v42 }
 0x298   :  { %732 = vrot.lane.b32.xlu1 %v2627_v17, %s1876_s29 }
 0x29a   :  { %645 = vrot.lane.b32.xlu0 %v2615_v0, %s1878_s11  ;;  %v594_v54 = vpop.permute.xlu1 %593 }
 0x29b   :  { %v601_v55 = vsel %vm51_vm0, 0.0, %v594_v54 }
 0x29c   :  { %649 = vrot.lane.b32.xlu1 %v2627_v17, %s1878_s11  ;;  %v596_v33 = vpop.permute.xlu0 %595  ;;  %v605_v60 = vmul.f32 %v601_v55, %v1955_v10  ;;  %v657_v15 = vrot.slane %v601_v55, 4  ;;  %v628_v62 = vmul.f32 %v601_v55, %v2005_v26  ;;  %v622_v25 = vmul.f32 %v601_v55, %v1999_v24 }
 0x29d   :  { %v2644_v63 = vsel %vm51_vm0, %v594_v54, %v596_v33  ;;  %v602_v18 = vsel %vm51_vm0, %v596_v33, 0.0  ;;  %v616_v9 = vmul.f32 %v601_v55, %v2009_v28  ;;  %v610_v46 = vmul.f32 %v601_v55, %v2013_v30 }
 0x29e   :  { %810 = vrot.lane.b32.xlu0 %v2627_v17, %s1877_s30  ;;  %v606_v6 = vmul.f32 %v2644_v63, %v1958_v11  ;;  %v639_v19 = vrot.slane %v605_v60, 4  ;;  %v658_v59 = vrot.slane %v2644_v63, 4  ;;  %v793_v39 = vrot.slane %v628_v62, 4 }
 0x29f   :  { %v764_v56 = vrot.slane %v622_v25, 4  ;;  %v659_v51 = vrot.slane %v602_v18, 4  ;;  %v715_v32 = vrot.slane %v616_v9, 4  ;;  %v686_v4 = vrot.slane %v610_v46, 4 }
 0x2a0   :  { %784 = vrot.lane.b32.xlu1 %v627_v21, %s1881_s14  ;;  %v640_v36 = vrot.slane %v606_v6, 4  ;;  %v2667_v35 = vsel %vm252_vm7, %v603_v13, %v639_v19  ;;  %v634_v1 = vmul.f32 %v601_v55, %v3166_v22  ;;  %v629_v54 = vmul.f32 %v2644_v63, %v2083_v52 }
 0x2a1   :  { %v630_v55 = vmul.f32 %v602_v18, %v2011_v29  ;;  %v617_v60 = vmul.f32 %v2644_v63, %v3164_v20 }
 0x2a2   :  { %780 = vrot.lane.b32.xlu0 %v625_v8, %s1881_s14  ;;  %v2664_v43 = vsel %vm252_vm7, %v604_v61, %v640_v36  ;;  %v845_v33 = vrot.slane %v634_v1, 4  ;;  %v794_v21 = vrot.slane %v629_v54, 4  ;;  %v623_v8 = vmul.f32 %v2644_v63, %v3163_v2  ;;  %v3167_v36 = vld [vmem:[#allocation3_spill] sm:$0xff] }
 0x2a3   :  { %v795_v13 = vrot.slane %v630_v55, 4  ;;  %v611_v61 = vmul.f32 %v2644_v63, %v3165_v42  ;;  %v636_v19 = vmul.f32 %v602_v18, %v3167_v36  ;;  %v633_v62 = vmul.f32 %v2627_v17, %v3167_v36 }
 0x2a4   :  { %755 = vrot.lane.b32.xlu1 %v621_v53, %s1882_s16  ;;  %v631_v53 = vmul.f32 %v2615_v0, %v3166_v22  ;;  %v765_v6 = vrot.slane %v623_v8, 4  ;;  %v716_v0 = vrot.slane %v617_v60, 4 }
 0x2a6   :  { %751 = vrot.lane.b32.xlu0 %v619_v12, %s1882_s16  ;;  %v851_v12 = vsel %vm252_vm7, %v631_v53, %v845_v33 }
 0x2a8   :  { %706 = vrot.lane.b32.xlu1 %v615_v44, %s1883_s17  ;;  %v624_v44 = vmul.f32 %v602_v18, %v2007_v27 }
 0x2aa   :  { %730 = vrot.lane.b32.xlu0 %v2620_v40, %s1876_s29 }
 0x2ac   :  { %677 = vrot.lane.b32.xlu1 %v609_v49, %s1880_s13  ;;  %v766_v49 = vrot.slane %v624_v44, 4 }
 0x2ae   :  { %702 = vrot.lane.b32.xlu0 %v613_v48, %s1883_s17  ;;  %v618_v48 = vmul.f32 %v602_v18, %v2015_v31 }
 0x2b0   :  { %816 = vrot.lane.b32.xlu1 %v657_v15, %s1877_s30 }
 0x2b2   :  { %673 = vrot.lane.b32.xlu0 %v607_v47, %s1880_s13  ;;  %v847_v47 = vrot.slane %v636_v19, 4 }
 0x2b4   :  { %738 = vrot.lane.b32.xlu1 %v657_v15, %s1876_s29  ;;  %v853_v25 = vsel %vm252_vm7, %v633_v62, %v847_v47 }
 0x2b6   :  { %647 = vrot.lane.b32.xlu0 %v2620_v40, %s1878_s11 }
 0x2b8   :  { %660 = vrot.lane.b32.xlu1 %v657_v15, %s1878_s11  ;;  %v687_v15 = vrot.slane %v611_v61, 4 }
 0x2ba   :  { %782 = vrot.lane.b32.xlu0 %v626_v50, %s1881_s14  ;;  %v717_v50 = vrot.slane %v618_v48, 4 }
 0x2bc   :  { %818 = vrot.lane.b32.xlu1 %v658_v59, %s1877_s30 }
 0x2be   :  { %753 = vrot.lane.b32.xlu0 %v620_v3, %s1882_s16  ;;  %v3168_v3 = vld [vmem:[#allocation4_spill] sm:$0xff] }
 0x2bf   :  { %v632_v17 = vmul.f32 %v2620_v40, %v3168_v3 }
 0x2c0   :  { %796 = vrot.lane.b32.xlu1 %v793_v39, %s1881_s14  ;;  %v635_v39 = vmul.f32 %v2644_v63, %v3168_v3 }
 0x2c2   :  { %704 = vrot.lane.b32.xlu0 %v614_v38, %s1883_s17 }
 0x2c4   :  { %767 = vrot.lane.b32.xlu1 %v764_v56, %s1882_s16 }
 0x2c6   :  { %675 = vrot.lane.b32.xlu0 %v608_v37, %s1880_s13  ;;  %v846_v37 = vrot.slane %v635_v39, 4 }
 0x2c7   :  { %v1423_v38 = vpop.permute.xlu0 %1422 }
 0x2c8   :  { %742 = vrot.lane.b32.xlu1 %v659_v51, %s1876_s29  ;;  %v852_v63 = vsel %vm252_vm7, %v632_v17, %v846_v37  ;;  %v2755_v9 = vsel %vm51_vm0, %v1423_v38, 0.0 }
 0x2c9   :  { %v1466_v40 = vmul.f32 %v2755_v9, %v2011_v29  ;;  %v1460_v46 = vmul.f32 %v2755_v9, %v2007_v27  ;;  %v1448_v33 = vmul.f32 %v2755_v9, %v2020_v34 }
 0x2ca   :  { %820 = vrot.lane.b32.xlu0 %v659_v51, %s1877_s30 }
 0x2cc   :  { %718 = vrot.lane.b32.xlu1 %v715_v32, %s1883_s17 }
 0x2ce   :  { %740 = vrot.lane.b32.xlu0 %v658_v59, %s1876_s29 }
 0x2d0   :  { %689 = vrot.lane.b32.xlu1 %v686_v4, %s1880_s13  ;;  %v1454_v4 = vmul.f32 %v2755_v9, %v2015_v31 }
 0x2d2   :  { %662 = vrot.lane.b32.xlu0 %v658_v59, %s1878_s11  ;;  %v612_v59 = vmul.f32 %v602_v18, %v2020_v34 }
 0x2d4   :  { %664 = vrot.lane.b32.xlu1 %v659_v51, %s1878_s11  ;;  %v688_v56 = vrot.slane %v612_v59, 4  ;;  %v1421_v51 = vpop.permute.xlu1 %1420 }
 0x2d5   :  { %v2746_v18 = vsel %vm51_vm0, %v1421_v51, %v1423_v38  ;;  %v2760_v32 = vsel %vm51_vm0, 0.0, %v1421_v51 }
 0x2d6   :  { %798 = vrot.lane.b32.xlu0 %v794_v21, %s1881_s14  ;;  %v1464_v54 = vmul.f32 %v2760_v32, %v2005_v26  ;;  %v1458_v8 = vmul.f32 %v2760_v32, %v1999_v24  ;;  %v1465_v48 = vmul.f32 %v2746_v18, %v2083_v52 }
 0x2d8   :  { %857 = vrot.lane.b32.xlu1 %v851_v12, %s1879_s12 }
 0x2da   :  { %769 = vrot.lane.b32.xlu0 %v765_v6, %s1882_s16 }
 0x2dc   :  { %800 = vrot.lane.b32.xlu1 %v795_v13, %s1881_s14  ;;  %v1452_v13 = vmul.f32 %v2760_v32, %v2009_v28 }
 0x2de   :  { %720 = vrot.lane.b32.xlu0 %v716_v0, %s1883_s17 }
 0x2e0   :  { %771 = vrot.lane.b32.xlu1 %v766_v49, %s1882_s16 }
 0x2e2   :  { %691 = vrot.lane.b32.xlu0 %v687_v15, %s1880_s13 }
 0x2e4   :  { %722 = vrot.lane.b32.xlu1 %v717_v50, %s1883_s17 }
 0x2e6   :  { %861 = vrot.lane.b32.xlu0 %v853_v25, %s1879_s12 }
 0x2e8   :  { %693 = vrot.lane.b32.xlu1 %v688_v56, %s1880_s13 }
 0x2ea   :  { %1647 = vrot.lane.b32.xlu0 %v2746_v18, %s1877_s30 }
 0x2ec   :  { %859 = vrot.lane.b32.xlu1 %v852_v63, %s1879_s12 }
 0x2ee   :  { %1571 = vrot.lane.b32.xlu0 %v2755_v9, %s1876_s29 }
 0x2f0   :  { %1645 = vrot.lane.b32.xlu1 %v2760_v32, %s1877_s30 }
 0x2f2   :  { %1623 = vrot.lane.b32.xlu0 %v1466_v40, %s1881_s14 }
 0x2f4   :  { %1567 = vrot.lane.b32.xlu1 %v2760_v32, %s1876_s29 }
 0x2f5   :  { %v1433_v1 = vpop.permute.xlu1 %1432 }
 0x2f6   :  { %1594 = vrot.lane.b32.xlu0 %v1460_v46, %s1882_s16  ;;  %v2783_v21 = vsel %vm51_vm0, 0.0, %v1433_v1  ;;  %v1447_v46 = vmul.f32 %v2746_v18, %v3165_v42 }
 0x2f7   :  { %v1435_v53 = vpop.permute.xlu0 %1434  ;;  %v2790_v55 = vrot.slane %v2783_v21, 4  ;;  %v1467_v19 = vmul.f32 %v2783_v21, %v2005_v26  ;;  %v1461_v50 = vmul.f32 %v2783_v21, %v1999_v24  ;;  %v1459_v26 = vmul.f32 %v2746_v18, %v3163_v2 }
 0x2f8   :  { %1649 = vrot.lane.b32.xlu1 %v2755_v9, %s1877_s30  ;;  %v2797_v6 = vsel %vm51_vm0, %v1433_v1, %v1435_v53  ;;  %v1441_v25 = vsel %vm51_vm0, %v1435_v53, 0.0  ;;  %v1453_v24 = vmul.f32 %v2746_v18, %v3164_v20  ;;  %v1455_v17 = vmul.f32 %v2783_v21, %v2009_v28 }
 0x2f9   :  { %v2808_v61 = vrot.slane %v2797_v6, 4  ;;  %v1632_v47 = vrot.slane %v1467_v19, 4  ;;  %v1603_v39 = vrot.slane %v1461_v50, 4  ;;  %v2835_v51 = vrot.slane %v1441_v25, 4 }
 0x2fa   :  { %1545 = vrot.lane.b32.xlu0 %v1454_v4, %s1883_s17  ;;  %v1473_v63 = vmul.f32 %v2783_v21, %v3166_v22  ;;  %v1554_v1 = vrot.slane %v1455_v17, 4  ;;  %v1469_v53 = vmul.f32 %v1441_v25, %v2011_v29  ;;  %v1462_v50 = vmul.f32 %v2797_v6, %v3163_v2 }
 0x2fb   :  { %v1451_v2 = vmul.f32 %v1441_v25, %v2020_v34  ;;  %vm872_vm0 = vcmask 588800  }
 0x2fc   :  { %1619 = vrot.lane.b32.xlu1 %v1464_v54, %s1881_s14  ;;  %v1684_v54 = vrot.slane %v1473_v63, 4  ;;  %v1634_v29 = vrot.slane %v1469_v53, 4 }
 0x2fd   :  { %v1527_v34 = vrot.slane %v1451_v2, 4 }
 0x2fe   :  { %1516 = vrot.lane.b32.xlu0 %v1448_v33, %s1880_s13  ;;  %v1470_v33 = vmul.f32 %v2760_v32, %v3166_v22  ;;  %v1468_v22 = vmul.f32 %v2797_v6, %v2083_v52 }
 0x300   :  { %1590 = vrot.lane.b32.xlu1 %v1458_v8, %s1882_s16 }
 0x302   :  { %1655 = vrot.lane.b32.xlu0 %v2790_v55, %s1877_s30 }
 0x304   :  { %v807_v12 = vpop.permute.xlu0 %806  ;;  %1569 = vrot.lane.b32.xlu1 %v2746_v18, %s1876_s29 }
 0x306   :  { %1577 = vrot.lane.b32.xlu0 %v2790_v55, %s1876_s29  ;;  %v809_v60 = vpop.permute.xlu1 %808 }
 0x307   :  { %v2804_v44 = vsel %vm235_vm8, %v807_v12, %v809_v60 }
 0x308   :  { %v729_v0 = vpop.permute.xlu0 %728  ;;  %1541 = vrot.lane.b32.xlu1 %v1452_v13, %s1883_s17  ;;  %v1690_v13 = vsel %vm252_vm7, %v1470_v33, %v1684_v54 }
 0x30a   :  { %1657 = vrot.lane.b32.xlu0 %v2808_v61, %s1877_s30  ;;  %v733_v49 = vpop.permute.xlu1 %732 }
 0x30c   :  { %v646_v15 = vpop.permute.xlu0 %645  ;;  %1621 = vrot.lane.b32.xlu1 %v1465_v48, %s1881_s14 }
 0x30e   :  { %1635 = vrot.lane.b32.xlu0 %v1632_v47, %s1881_s14  ;;  %v650_v59 = vpop.permute.xlu1 %649  ;;  %v1633_v47 = vrot.slane %v1468_v22, 4  ;;  %v1471_v22 = vmul.f32 %v2746_v18, %v3168_v3 }
 0x310   :  { %v811_v62 = vpop.permute.xlu0 %810  ;;  %1592 = vrot.lane.b32.xlu1 %v1459_v26, %s1882_s16 }
 0x311   :  { %v2825_v38 = vsel %vm235_vm8, %v809_v60, %v811_v62  ;;  %v1457_v62 = vmul.f32 %v1441_v25, %v2015_v31  ;;  %v1474_v31 = vmul.f32 %v2797_v6, %v3168_v3 }
 0x312   :  { %1606 = vrot.lane.b32.xlu0 %v1603_v39, %s1882_s16  ;;  %v2828_v56 = vpop.permute.xlu1 %784 }
 0x313   :  { %v1556_v63 = vrot.slane %v1457_v62, 4 }
 0x314   :  { %v2832_v37 = vpop.permute.xlu0 %780  ;;  %1543 = vrot.lane.b32.xlu1 %v1453_v24, %s1883_s17  ;;  %v1604_v24 = vrot.slane %v1462_v50, 4 }
 0x316   :  { %1581 = vrot.lane.b32.xlu0 %v2835_v51, %s1876_s29  ;;  %v2843_v40 = vpop.permute.xlu1 %755 }
 0x318   :  { %v2847_v4 = vpop.permute.xlu0 %751  ;;  %1514 = vrot.lane.b32.xlu1 %v1447_v46, %s1880_s13 }
 0x31a   :  { %1557 = vrot.lane.b32.xlu0 %v1554_v1, %s1883_s17  ;;  %v2851_v28 = vpop.permute.xlu1 %706 }
 0x31c   :  { %v731_v8 = vpop.permute.xlu0 %730  ;;  %1659 = vrot.lane.b32.xlu1 %v2835_v51, %s1877_s30 }
 0x31d   :  { %v2859_v12 = vsel %vm193_vm10, %v729_v0, %v731_v8  ;;  %v2862_v60 = vsel %vm193_vm10, %v731_v8, %v733_v49  ;;  %v1463_v0 = vmul.f32 %v1441_v25, %v2007_v27  ;;  %v1456_v27 = vmul.f32 %v2797_v6, %v3164_v20 }
 0x31e   :  { %1696 = vrot.lane.b32.xlu0 %v1690_v13, %s1879_s12  ;;  %v2866_v19 = vpop.permute.xlu1 %677  ;;  %v1450_v20 = vmul.f32 %v2797_v6, %v3165_v42  ;;  %v1475_v8 = vmul.f32 %v1441_v25, %v3167_v36  ;;  %v1449_v42 = vmul.f32 %v2783_v21, %v2013_v30 }
 0x31f   :  { %v1605_v52 = vrot.slane %v1463_v0, 4  ;;  %v1555_v33 = vrot.slane %v1456_v27, 4  ;;  %v1446_v27 = vmul.f32 %v2760_v32, %v2013_v30 }
 0x320   :  { %v2870_v48 = vpop.permute.xlu0 %702  ;;  %1579 = vrot.lane.b32.xlu1 %v2808_v61, %s1876_s29  ;;  %v1526_v13 = vrot.slane %v1450_v20, 4  ;;  %v1525_v3 = vrot.slane %v1449_v42, 4 }
 0x322   :  { %1639 = vrot.lane.b32.xlu0 %v1634_v29, %s1881_s14  ;;  %v2876_v49 = vpop.permute.xlu1 %816  ;;  %v1686_v29 = vrot.slane %v1475_v8, 4 }
 0x324   :  { %v2880_v26 = vpop.permute.xlu0 %673  ;;  %1637 = vrot.lane.b32.xlu1 %v1633_v47, %s1881_s14  ;;  %v1472_v47 = vmul.f32 %v2755_v9, %v3167_v36 }
 0x326   :  { %1610 = vrot.lane.b32.xlu0 %v1605_v52, %s1882_s16  ;;  %v739_v39 = vpop.permute.xlu1 %738  ;;  %v1692_v52 = vsel %vm252_vm7, %v1472_v47, %v1686_v29 }
 0x328   :  { %v648_v17 = vpop.permute.xlu0 %647  ;;  %1608 = vrot.lane.b32.xlu1 %v1604_v24, %s1882_s16 }
 0x329   :  { %v651_v46 = vsel %vm151_vm12, %v646_v15, %v648_v17  ;;  %v2891_v1 = vsel %vm151_vm12, %v648_v17, %v650_v59  ;;  %v1685_v15 = vrot.slane %v1474_v31, 4 }
 0x32a   :  { %1561 = vrot.lane.b32.xlu0 %v1556_v63, %s1883_s17  ;;  %v661_v54 = vpop.permute.xlu1 %660 }
 0x32b   :  { %v1691_v25 = vsel %vm252_vm7, %v1471_v22, %v1685_v15 }
 0x32c   :  { %v2899_v53 = vpop.permute.xlu0 %782  ;;  %1559 = vrot.lane.b32.xlu1 %v1555_v33, %s1883_s17 }
 0x32e   :  { %1532 = vrot.lane.b32.xlu0 %v1527_v34, %s1880_s13  ;;  %v819_v59 = vpop.permute.xlu1 %818 }
 0x330   :  { %v2905_v0 = vpop.permute.xlu0 %753  ;;  %1530 = vrot.lane.b32.xlu1 %v1526_v13, %s1880_s13 }
 0x332   :  { %1698 = vrot.lane.b32.xlu0 %v1691_v25, %s1879_s12  ;;  %v797_v50 = vpop.permute.xlu1 %796 }
 0x334   :  { %v2915_v62 = vpop.permute.xlu0 %704  ;;  %1700 = vrot.lane.b32.xlu1 %v1692_v52, %s1879_s12 }
 0x336   :  { %1528 = vrot.lane.b32.xlu0 %v1525_v3, %s1880_s13  ;;  %v768_v24 = vpop.permute.xlu1 %767 }
 0x338   :  { %v2921_v17 = vpop.permute.xlu0 %675  ;;  %1512 = vrot.lane.b32.xlu1 %v1446_v27, %s1880_s13 }
 0x33a   :  { %1488 = vrot.lane.b32.xlu0 %v2755_v9, %s1878_s11  ;;  %v743_v36 = vpop.permute.xlu1 %742 }
 0x33c   :  { %v821_v63 = vpop.permute.xlu0 %820  ;;  %1486 = vrot.lane.b32.xlu1 %v2746_v18, %s1878_s11 }
 0x33d   :  { %v823_v52 = vsel %vm235_vm8, %v819_v59, %v821_v63  ;;  %v787_v63 = vsel %vm224_vm9, %v2899_v53, %v2828_v56 }
 0x33e   :  { %1503 = vrot.lane.b32.xlu0 %v2835_v51, %s1878_s11  ;;  %v719_v2 = vpop.permute.xlu1 %718  ;;  %v841_v14 = vsel %vm252_vm7, %v2825_v38, %v823_v52 }
 0x340   :  { %v741_v31 = vpop.permute.xlu0 %740  ;;  %1501 = vrot.lane.b32.xlu1 %v2808_v61, %s1878_s11  ;;  %v42_v61 = vld [vmem:[%s3129_s9] sm:$0xf] }
 0x341   :  { %v744_v30 = vsel %vm193_vm10, %v739_v39, %v741_v31 }
 0x342   :  { %1499 = vrot.lane.b32.xlu0 %v2790_v55, %s1878_s11  ;;  %v2935_v33 = vpop.permute.xlu1 %689  ;;  %v834_v9 = vsel %vm252_vm7, %v2859_v12, %v744_v30 }
 0x344   :  { %v2939_v20 = vpop.permute.xlu0 %662  ;;  %1484 = vrot.lane.b32.xlu1 %v2760_v32, %s1878_s11 }
 0x345   :  { %v666_v51 = vsel %vm151_vm12, %v661_v54, %v2939_v20 }
 0x346   :  { %v665_v39 = vpop.permute.xlu1 %664  ;;  %v2949_v55 = vsel %vm252_vm7, %v651_v46, %v666_v51  ;;  %v822_v46 = vsel %vm235_vm8, %v2876_v49, %v819_v59 }
 0x348   :  { %v799_v8 = vpop.permute.xlu0 %798  ;;  %869 = vperm.xlu1 %1845, %v42_v61  }
 0x349   :  { %v802_v16 = vsel %vm224_vm9, %v797_v50, %v799_v8 }
 0x34a   :  { %v858_v34 = vpop.permute.xlu1 %857 }
 0x34c   :  { %v770_v12 = vpop.permute.xlu0 %769 }
 0x34d   :  { %v773_v50 = vsel %vm210_vm11, %v768_v24, %v770_v12 }
 0x34e   :  { %v801_v15 = vpop.permute.xlu1 %800 }
 0x34f   :  { %v803_v51 = vsel %vm224_vm9, %v799_v8, %v801_v15  ;;  %v786_v15 = vsel %vm224_vm9, %v2832_v37, %v2899_v53  ;;  %v745_v8 = vsel %vm193_vm10, %v741_v31, %v743_v36  ;;  %v757_v53 = vsel %vm210_vm11, %v2847_v4, %v2905_v0 }
 0x350   :  { %v721_v13 = vpop.permute.xlu0 %720  ;;  %v839_v56 = vsel %vm252_vm7, %v787_v63, %v803_v51  ;;  %v838_v37 = vsel %vm252_vm7, %v786_v15, %v802_v16  ;;  %v835_v16 = vsel %vm252_vm7, %v2862_v60, %v745_v8  ;;  %v709_v4 = vsel %vm182_vm14, %v2915_v62, %v2851_v28 }
 0x351   :  { %v724_v36 = vsel %vm182_vm14, %v719_v2, %v721_v13  ;;  %v680_v60 = vsel %vm165_vm13, %v2921_v17, %v2866_v19  ;;  %v667_v28 = vsel %vm151_vm12, %v2939_v20, %v665_v39 }
 0x352   :  { %v772_v22 = vpop.permute.xlu1 %771  ;;  %v829_v19 = vsel %vm252_vm7, %v2891_v1, %v667_v28 }
 0x353   :  { %v774_v49 = vsel %vm210_vm11, %v770_v12, %v772_v22 }
 0x354   :  { %v692_v29 = vpop.permute.xlu0 %691 }
 0x355   :  { %v695_v2 = vsel %vm165_vm13, %v2935_v33, %v692_v29 }
 0x356   :  { %v723_v42 = vpop.permute.xlu1 %722 }
 0x357   :  { %v725_v12 = vsel %vm182_vm14, %v721_v13, %v723_v42  ;;  %v708_v42 = vsel %vm182_vm14, %v2870_v48, %v2915_v62  ;;  %v679_v48 = vsel %vm165_vm13, %v2880_v26, %v2921_v17  ;;  %v3028_v26 = vld [vmem:[%s3130_s8] sm:$0xf] }
 0x358   :  { %v862_v25 = vpop.permute.xlu0 %861  ;;  %v833_v13 = vsel %vm252_vm7, %v709_v4, %v725_v12 }
 0x35a   :  { %v694_v47 = vpop.permute.xlu1 %693 }
 0x35c   :  { %v2951_v54 = vpop.permute.xlu0 %1647 }
 0x35e   :  { %v860_v3 = vpop.permute.xlu1 %859 }
 0x35f   :  { %v864_v27 = vsel %vm249_vm6, %v860_v3, %v862_v25  ;;  %v863_v30 = vsel %vm249_vm6, %v858_v34, %v860_v3  ;;  %v840_v34 = vsel %vm252_vm7, %v2804_v44, %v822_v46 }
 0x360   :  { %v2959_v61 = vpop.permute.xlu0 %1571  ;;  %890 = vmatprep.subr.mxu0 %v864_v27 }
 0x361   :  { %891 = vmatpush1.msra.mxu0 %v863_v30 }
 0x362   :  { %892 = vmatprep.subr.mxu0 %v841_v14  ;;  %v1646_v59 = vpop.permute.xlu1 %1645  ;;  %v758_v14 = vsel %vm210_vm11, %v2905_v0, %v2843_v40  ;;  %v836_v40 = vsel %vm252_vm7, %v757_v53, %v773_v50  ;;  %v696_v0 = vsel %vm165_vm13, %v692_v29, %v694_v47  ;;  %v832_v47 = vsel %vm252_vm7, %v708_v42, %v724_v36 }
 0x363   :  { %v2976_v38 = vsel %vm235_vm8, %v1646_v59, %v2951_v54  ;;  %893 = vmatpush1.msra.mxu0 %v840_v34  ;;  %v837_v24 = vsel %vm252_vm7, %v758_v14, %v774_v49  ;;  %v831_v62 = vsel %vm252_vm7, %v680_v60, %v696_v0 }
 0x364   :  { %v2983_v44 = vpop.permute.xlu0 %1623  ;;  %894 = vmatprep.subr.mxu0 %v839_v56 }
 0x365   :  { %895 = vmatpush1.msra.mxu0 %v838_v37 }
 0x366   :  { %896 = vmatprep.subr.mxu0 %v837_v24  ;;  %v2991_v22 = vpop.permute.xlu1 %1567 }
 0x367   :  { %897 = vmatpush1.msra.mxu0 %v836_v40 }
 0x368   :  { %v3001_v31 = vpop.permute.xlu0 %1594  ;;  %898 = vmatprep.subr.mxu0 %v835_v16 }
 0x369   :  { %899 = vmatpush1.msra.mxu0 %v834_v9  ;;  %v830_v9 = vsel %vm252_vm7, %v679_v48, %v695_v2 }
 0x36a   :  { %900 = vmatprep.subr.mxu0 %v833_v13  ;;  %v1650_v25 = vpop.permute.xlu1 %1649 }
 0x36b   :  { %901 = vmatpush1.msra.mxu0 %v832_v47  ;;  %v1652_v0 = vsel %vm235_vm8, %v2951_v54, %v1650_v25 }
 0x36c   :  { %v3019_v33 = vpop.permute.xlu0 %1545  ;;  %902 = vmatprep.subr.mxu0 %v831_v62 }
 0x36d   :  { %903 = vmatpush1.msra.mxu0 %v830_v9 }
 0x36e   :  { %904 = vmatprep.subr.mxu0 %v829_v19  ;;  %v1620_v20 = vpop.permute.xlu1 %1619 }
 0x36f   :  { %905 = vmatpush1.msra.mxu0 %v2949_v55 }
 0x370   :  { %v3030_v17 = vpop.permute.xlu0 %1516  ;;  %906 = vmatprep.subr.mxu0 %v2664_v43 }
 0x371   :  { %907 = vmatpush1.msra.mxu0 %v2667_v35 }
 0x372   :  { %1813 = vmatmul.mubr.msk.f32.vlgmr.msra.gmra.mxu0 %vm872_vm0, %v3028_v26  ;;  %v1591_v1 = vpop.permute.xlu1 %1590 }
 0x373   :  { %1770 = vmatprep.mubr.f32.mxu0 %v3160_v57 }
 0x374   :  { %v1656_v39 = vpop.permute.xlu0 %1655 }
 0x376   :  { %v1570_v55 = vpop.permute.xlu1 %1569 }
 0x378   :  { %v1578_v29 = vpop.permute.xlu0 %1577 }
 0x37a   :  { %v3037_v52 = vpop.permute.xlu1 %1541 }
 0x37c   :  { %v1658_v3 = vpop.permute.xlu0 %1657 }
 0x37d   :  { %v1661_v16 = vsel %vm235_vm8, %v1656_v39, %v1658_v3 }
 0x37e   :  { %v1622_v46 = vpop.permute.xlu1 %1621  ;;  %v1679_v54 = vsel %vm252_vm7, %v2976_v38, %v1661_v16  ;;  %v1443_v16 = vmul.f32 %v2746_v18, %v1958_v11 }
 0x37f   :  { %v1626_v47 = vsel %vm224_vm9, %v1622_v46, %v2983_v44  ;;  %v1625_v25 = vsel %vm224_vm9, %v1620_v20, %v1622_v46  ;;  %v1574_v46 = vsel %vm193_vm10, %v1570_v55, %v2959_v61 }
 0x380   :  { %v1636_v27 = vpop.permute.xlu0 %1635 }
 0x382   :  { %v1593_v30 = vpop.permute.xlu1 %1592 }
 0x383   :  { %v1597_v39 = vsel %vm210_vm11, %v1593_v30, %v3001_v31 }
 0x384   :  { %v1607_v51 = vpop.permute.xlu0 %1606 }
 0x386   :  { %v1544_v63 = vpop.permute.xlu1 %1543 }
 0x388   :  { %v1582_v43 = vpop.permute.xlu0 %1581 }
 0x38a   :  { %v3039_v49 = vpop.permute.xlu1 %1514 }
 0x38c   :  { %v1558_v35 = vpop.permute.xlu0 %1557 }
 0x38e   :  { %v1660_v59 = vpop.permute.xlu1 %1659 }
 0x38f   :  { %v1662_v40 = vsel %vm235_vm8, %v1658_v3, %v1660_v59  ;;  %v1596_v59 = vsel %vm210_vm11, %v1591_v1, %v1593_v30 }
 0x390   :  { %v1697_v34 = vpop.permute.xlu0 %1696  ;;  %v1680_v28 = vsel %vm252_vm7, %v1652_v0, %v1662_v40  ;;  %v1442_v0 = vmul.f32 %v2760_v32, %v1955_v10 }
 0x392   :  { %v1580_v15 = vpop.permute.xlu1 %1579 }
 0x393   :  { %v1584_v3 = vsel %vm193_vm10, %v1580_v15, %v1582_v43  ;;  %v1583_v38 = vsel %vm193_vm10, %v1578_v29, %v1580_v15  ;;  %v1548_v29 = vsel %vm182_vm14, %v1544_v63, %v3019_v33  ;;  %v1519_v33 = vsel %vm165_vm13, %v3039_v49, %v3030_v17 }
 0x394   :  { %v1640_v50 = vpop.permute.xlu0 %1639  ;;  %v1674_v1 = vsel %vm252_vm7, %v1574_v46, %v1584_v3 }
 0x396   :  { %v1638_v57 = vpop.permute.xlu1 %1637 }
 0x397   :  { %v1642_v42 = vsel %vm224_vm9, %v1638_v57, %v1640_v50  ;;  %v1641_v60 = vsel %vm224_vm9, %v1636_v27, %v1638_v57  ;;  %v1547_v57 = vsel %vm182_vm14, %v3037_v52, %v1544_v63  ;;  %v1444_v52 = vmul.f32 %v2783_v21, %v1955_v10 }
 0x398   :  { %v1611_v56 = vpop.permute.xlu0 %1610  ;;  %v1678_v19 = vsel %vm252_vm7, %v1626_v47, %v1642_v42  ;;  %v1677_v27 = vsel %vm252_vm7, %v1625_v25, %v1641_v60 }
 0x399   :  { %v1478_v21 = vrot.slane %v1444_v52, 4 }
 0x39a   :  { %v1609_v14 = vpop.permute.xlu1 %1608 }
 0x39b   :  { %v1613_v48 = vsel %vm210_vm11, %v1609_v14, %v1611_v56  ;;  %v1612_v9 = vsel %vm210_vm11, %v1607_v51, %v1609_v14 }
 0x39c   :  { %v1562_v8 = vpop.permute.xlu0 %1561  ;;  %v1676_v20 = vsel %vm252_vm7, %v1597_v39, %v1613_v48  ;;  %v1675_v43 = vsel %vm252_vm7, %v1596_v59, %v1612_v9 }
 0x39e   :  { %v1560_v37 = vpop.permute.xlu1 %1559 }
 0x39f   :  { %v1564_v51 = vsel %vm182_vm14, %v1560_v37, %v1562_v8  ;;  %v1563_v50 = vsel %vm182_vm14, %v1558_v35, %v1560_v37  ;;  %v1445_v35 = vmul.f32 %v2797_v6, %v1958_v11 }
 0x3a0   :  { %v1533_v53 = vpop.permute.xlu0 %1532  ;;  %v1671_v14 = vsel %vm252_vm7, %v1547_v57, %v1563_v50 }
 0x3a2   :  { %v1531_v24 = vpop.permute.xlu1 %1530 }
 0x3a3   :  { %v1535_v30 = vsel %vm165_vm13, %v1531_v24, %v1533_v53 }
 0x3a4   :  { %v1699_v12 = vpop.permute.xlu0 %1698  ;;  %v1670_v6 = vsel %vm252_vm7, %v1519_v33, %v1535_v30 }
 0x3a5   :  { %v1702_v2 = vsel %vm249_vm6, %v1697_v34, %v1699_v12  ;;  %v1573_v34 = vsel %vm193_vm10, %v2991_v22, %v1570_v55  ;;  %v1672_v55 = vsel %vm252_vm7, %v1548_v29, %v1564_v51 }
 0x3a6   :  { %v1701_v36 = vpop.permute.xlu1 %1700  ;;  %v1673_v15 = vsel %vm252_vm7, %v1573_v34, %v1583_v38 }
 0x3a7   :  { %v1703_v4 = vsel %vm249_vm6, %v1699_v12, %v1701_v36  ;;  %v1479_v12 = vrot.slane %v1445_v35, 4  ;;  %v3170_v35 = vld [vmem:[#allocation9_spill] sm:$0xff] }
 0x3a8   :  { %v1529_v13 = vpop.permute.xlu0 %1528  ;;  %1720 = vmatprep.subr.mxu0 %v1703_v4 }
 0x3a9   :  { %1721 = vmatpush1.msra.mxu0 %v1702_v2  ;;  %v1534_v63 = vsel %vm165_vm13, %v1529_v13, %v1531_v24  ;;  %v1666_v42 = vsel %vm252_vm7, %v1443_v16, %v1479_v12  ;;  %v1665_v2 = vsel %vm252_vm7, %v1442_v0, %v1478_v21 }
 0x3aa   :  { %1722 = vmatprep.subr.mxu0 %v1680_v28  ;;  %v1513_v62 = vpop.permute.xlu1 %1512 }
 0x3ab   :  { %1723 = vmatpush1.msra.mxu0 %v1679_v54  ;;  %v1518_v22 = vsel %vm165_vm13, %v1513_v62, %v3039_v49 }
 0x3ac   :  { %v1489_v44 = vpop.permute.xlu0 %1488  ;;  %1724 = vmatprep.subr.mxu0 %v1678_v19  ;;  %v1669_v17 = vsel %vm252_vm7, %v1518_v22, %v1534_v63  ;;  %v3169_v22 = vld [vmem:[#allocation8_spill] sm:$0xff] }
 0x3ad   :  { %1725 = vmatpush1.msra.mxu0 %v1677_v27 }
 0x3ae   :  { %1726 = vmatprep.subr.mxu0 %v1676_v20  ;;  %v1487_v31 = vpop.permute.xlu1 %1486 }
 0x3af   :  { %1727 = vmatpush1.msra.mxu0 %v1675_v43  ;;  %v1491_v8 = vsel %vm151_vm12, %v1487_v31, %v1489_v44 }
 0x3b0   :  { %v1504_v61 = vpop.permute.xlu0 %1503  ;;  %1728 = vmatprep.subr.mxu0 %v1674_v1 }
 0x3b1   :  { %1729 = vmatpush1.msra.mxu0 %v1673_v15 }
 0x3b2   :  { %1730 = vmatprep.subr.mxu0 %v1672_v55  ;;  %v1502_v56 = vpop.permute.xlu1 %1501 }
 0x3b3   :  { %v1506_v37 = vsel %vm151_vm12, %v1502_v56, %v1504_v61  ;;  %1731 = vmatpush1.msra.mxu0 %v1671_v14 }
 0x3b4   :  { %v1500_v53 = vpop.permute.xlu0 %1499  ;;  %1732 = vmatprep.subr.mxu0 %v1670_v6  ;;  %v1668_v49 = vsel %vm252_vm7, %v1491_v8, %v1506_v37 }
 0x3b5   :  { %1733 = vmatpush1.msra.mxu0 %v1669_v17  ;;  %v1505_v24 = vsel %vm151_vm12, %v1500_v53, %v1502_v56 }
 0x3b6   :  { %1734 = vmatprep.subr.mxu0 %v1668_v49  ;;  %v1485_v40 = vpop.permute.xlu1 %1484 }
 0x3b7   :  { %v1490_v36 = vsel %vm151_vm12, %v1485_v40, %v1487_v31 }
 0x3b8   :  { %v1667_v4 = vsel %vm252_vm7, %v1490_v36, %v1505_v24 }
 0x3b9   :  { %1735 = vmatpush1.msra.mxu0 %v1667_v4 }
 0x3ba   :  { %1736 = vmatprep.subr.mxu0 %v1666_v42 }
 0x3bb   :  { %1737 = vmatpush1.msra.mxu0 %v1665_v2 }
 0x3bc   :  { %1824 = vmatmul.mubr.msk.f32.vlgmr.msra.gmra.mxu0 %vm872_vm0, %v3028_v26 }
 0x3c3   :  { %v870_v13 = vpop.permute.xlu1 %869 }
 0x432   :  { %v942_v60 = vpop.f32.mrf.mxu0 }
 0x433   :  { %v943_v28 = vadd.f32 %v942_v60, %v870_v13 }
 0x434   :  { %v944_v47 = vpop.f32.mrf.mxu0 }
 0x435   :  { %v1814_v11 = vmul.f32 -1.442695, %v943_v28  ;;  %v945_v18 = vadd.f32 %v944_v47, %v870_v13 }
 0x437   :  { %1850 = vpow2.f32 %v1814_v11  ;;  %v1815_v48 = vmul.f32 -1.442695, %v945_v18 }
 0x439   :  { %1852 = vpow2.f32 %v1815_v48 }
 0x444   :  { %v1851_v10 = vpop.eup %1850 }
 0x445   :  { %v953_v32 = vadd.f32 1.0, %v1851_v10 }
 0x446   :  { %v1853_v62 = vpop.eup %1852 }
 0x447   :  { %1854 = vrcp.f32 %v953_v32  ;;  %v954_v54 = vadd.f32 1.0, %v1853_v62 }
 0x449   :  { %1856 = vrcp.f32 %v954_v54 }
 0x454   :  { %v1855_v25 = vpop.eup %1854 }
 0x455   :  { %v961_v9 = vsub.f32 1.0, %v1855_v25  ;;  %v959_v3 = vmul.f32 %v1855_v25, %v2569_v41 }
 0x456   :  { %v1857_v19 = vpop.eup %1856 }
 0x457   :  { %v963_v26 = vmul.f32 %v961_v9, %v2581_v58  ;;  %v962_v39 = vsub.f32 1.0, %v1857_v19  ;;  %v960_v44 = vmul.f32 %v1857_v19, %v2572_v45 }
 0x459   :  { %v964_v27 = vmul.f32 %v962_v39, %v2584_v23  ;;  %v965_v59 = vadd.f32 %v963_v26, %v959_v3 }
 0x45b   :  { %v966_v38 = vadd.f32 %v964_v27, %v960_v44 }
 0x45d   :  { %v969_v20 = vcombine.low %v965_v59, %v966_v38 }
 0x45f   :  { %971 = vst [vmem:[%s3131_s10] sm:$0xff] %v969_v20 }
 0x47c   :  { %v1772_v46 = vpop.f32.mrf.mxu0 }
 0x47d   :  { %v1773_v51 = vadd.f32 %v1772_v46, %v870_v13 }
 0x47e   :  { %v1774_v31 = vpop.f32.mrf.mxu0 }
 0x47f   :  { %v1825_v43 = vmul.f32 -1.442695, %v1773_v51  ;;  %v1775_v34 = vadd.f32 %v1774_v31, %v870_v13 }
 0x481   :  { %1858 = vpow2.f32 %v1825_v43  ;;  %v1826_v58 = vmul.f32 -1.442695, %v1775_v34 }
 0x483   :  { %1860 = vpow2.f32 %v1826_v58 }
 0x48e   :  { %v1859_v41 = vpop.eup %1858 }
 0x48f   :  { %v1783_v50 = vadd.f32 1.0, %v1859_v41 }
 0x490   :  { %v1861_v45 = vpop.eup %1860 }
 0x491   :  { %1862 = vrcp.f32 %v1783_v50  ;;  %v1784_v23 = vadd.f32 1.0, %v1861_v45 }
 0x493   :  { %1864 = vrcp.f32 %v1784_v23 }
 0x49e   :  { %v1863_v1 = vpop.eup %1862 }
 0x49f   :  { %v1791_v29 = vsub.f32 1.0, %v1863_v1  ;;  %v1789_v57 = vmul.f32 %v1863_v1, %v2593_v7 }
 0x4a0   :  { %v1865_v30 = vpop.eup %1864 }
 0x4a1   :  { %v1793_v61 = vmul.f32 %v1791_v29, %v2605_v5  ;;  %v1792_v15 = vsub.f32 1.0, %v1865_v30  ;;  %v1790_v55 = vmul.f32 %v1865_v30, %v3169_v22 }
 0x4a3   :  { %v1794_v33 = vmul.f32 %v1792_v15, %v3170_v35  ;;  %v1795_v56 = vadd.f32 %v1793_v61, %v1789_v57 }
 0x4a5   :  { %v1796_v14 = vadd.f32 %v1794_v33, %v1790_v55 }
 0x4a7   :  { %v1799_v52 = vcombine.low %v1795_v56, %v1796_v14 }
 0x4a9   :  { %1827 = vst [vmem:[%s3131_s10 + $0x8] sm:$0xff] %v1799_v52 }

</bundles_post_ra>
